<compile_context>
chip_gen: v5e
topology: v5e:2x2
jax: 0.10.0
libtpu: 0.0.40
codegen_flags: <defaults>
</compile_context>

<pallas_src>
import functools

import jax
import jax.numpy as jnp
from jax.experimental import pallas as pl
from jax.experimental.pallas import tpu as pltpu


# ----------------------------------------------------------------------------- utils
def _round_up(x: int, m: int) -> int:
    return ((x + m - 1) // m) * m


def _pad2(a, rows: int, cols: int):
    """Zero-pad a 2-D array to (rows, cols)."""
    out = jnp.zeros((rows, cols), a.dtype)
    return out.at[: a.shape[0], : a.shape[1]].set(a)


# ----------------------------------------------------------------------------- kernel
def _encoder_kernel(adj_ref, feat_ref, wg_ref, bg_ref, wf_ref, bf_ref,
                    o_ref, hx_ref, *, tm: int, apply_ff: bool, compute_dtype):
    """Fused encoder.

    Grid = (num_gcn_layers, num_row_tiles); layer stage is the OUTER axis so every
    row tile of layer s finishes before layer s+1 starts (the adj @ hx step mixes
    all rows). hx_ref is a (2, N_pad, D_pad) f32 ping-pong scratch holding the full
    current / next node-feature matrix.
    """
    s = pl.program_id(0)          # GCN layer / stage index (outer)
    t = pl.program_id(1)          # node row-tile index (inner)
    n_stages = pl.num_programs(0)

    # Stage 0, tile 0: bring the input features into ping-pong slot 0 once.
    @pl.when(jnp.logical_and(s == 0, t == 0))
    def _():
        hx_ref[0] = feat_ref[...]

    read_slot = s % 2
    write_slot = (s + 1) % 2

    adj_t = adj_ref[...].astype(compute_dtype)            # (TM, N_pad)
    hx_full = hx_ref[read_slot].astype(compute_dtype)     # (N_pad, D_pad)

    # GCN layer s for this row tile:
    #   out = act( adj @ (hx @ W) + b )  ==  act( (adj_tile @ hx) @ W + b )
    agg = jnp.dot(adj_t, hx_full, preferred_element_type=jnp.float32)     # (TM, D_pad)
    out = jnp.dot(agg.astype(compute_dtype),
                  wg_ref[...].astype(compute_dtype),
                  preferred_element_type=jnp.float32) + bg_ref[...]       # f32 bias add

    is_last = s == n_stages - 1

    @pl.when(jnp.logical_not(is_last))
    def _():
        # Hidden GCN layer: ReLU, stash full-row result for the next layer.
        h = jnp.maximum(out, 0.0)
        row0 = pl.multiple_of(t * tm, tm)
        hx_ref[write_slot, pl.ds(row0, tm), :] = h
        o_ref[...] = h.astype(o_ref.dtype)   # keep output block always defined

    @pl.when(is_last)
    def _():
        # Last GCN layer uses identity activation; fuse the FF (local_d) projector:
        # linear shortcut + 3x (Linear+ReLU) block, summed.
        if apply_ff:
            x_c = out.astype(compute_dtype)
            short = jnp.dot(x_c, wf_ref[3].astype(compute_dtype),
                            preferred_element_type=jnp.float32) + bf_ref[3]
            h = jnp.maximum(jnp.dot(x_c, wf_ref[0].astype(compute_dtype),
                                    preferred_element_type=jnp.float32) + bf_ref[0], 0.0)
            h = jnp.maximum(jnp.dot(h.astype(compute_dtype), wf_ref[1].astype(compute_dtype),
                                    preferred_element_type=jnp.float32) + bf_ref[1], 0.0)
            h = jnp.maximum(jnp.dot(h.astype(compute_dtype), wf_ref[2].astype(compute_dtype),
                                    preferred_element_type=jnp.float32) + bf_ref[2], 0.0)
            o_ref[...] = (short + h).astype(o_ref.dtype)
        else:
            o_ref[...] = out.astype(o_ref.dtype)


# ----------------------------------------------------------------------------- wrapper
def encoder_forward(feat, adj, gcn_params, ff_params, *, ff=True, tm=128,
                    compute_dtype=jnp.float32):
    """Encoder.forward for x.typ == NODES, actual_indices=None, name='gcn'."""
    n, d_in = feat.shape
    num_layers = len(gcn_params)
    dims = [d_in] + [w.shape[1] for (w, _) in gcn_params]
    d_out = dims[-1]

    d_pad = _round_up(max(dims), 128)           # lane-dense feature dim
    n_pad = _round_up(max(n, tm), tm)           # node rows, multiple of row tile
    n_tiles = n_pad // tm

    # Zero-pad everything; padding is exact (padded rows/cols stay zero / sliced off).
    feat_p = _pad2(feat.astype(jnp.float32), n_pad, d_pad)
    adj_p = _pad2(adj.astype(jnp.float32), n_pad, n_pad)
    wg = jnp.stack([_pad2(w, d_pad, d_pad) for (w, _) in gcn_params])   # (L, Dp, Dp)
    bg = jnp.stack([_pad2(b, 1, d_pad) for (_, b) in gcn_params])       # (L, 1, Dp)
    w1, b1, w2, b2, w3, b3, ws, bs = ff_params
    wf = jnp.stack([_pad2(w, d_pad, d_pad) for w in (w1, w2, w3, ws)])  # (4, Dp, Dp)
    bf = jnp.stack([_pad2(b, 1, d_pad) for b in (b1, b2, b3, bs)])      # (4, 1, Dp)

    # Advisory cost estimate so XLA can overlap surrounding ops.
    flops = num_layers * (2 * n_pad * n_pad * d_pad + 2 * n_pad * d_pad * d_pad)
    if ff:
        flops += 4 * 2 * n_pad * d_pad * d_pad
    bytes_accessed = 4 * (num_layers * n_pad * n_pad + 2 * n_pad * d_pad
                          + (num_layers + 4) * d_pad * d_pad
                          + (num_layers + 4) * d_pad)
    cost = pl.CostEstimate(flops=int(flops), transcendentals=0,
                           bytes_accessed=int(bytes_accessed))

    # Explicit VMEM budget: double-buffered streamed blocks + resident weights + scratch.
    vmem_bytes = 4 * (2 * tm * n_pad            # adj row tile (double buffered)
                      + n_pad * d_pad           # feat (resident)
                      + 2 * (d_pad * d_pad + d_pad)   # per-layer W/b (double buffered)
                      + 4 * (d_pad * d_pad + d_pad)   # FF W/b (resident)
                      + 2 * tm * d_pad          # output tile (double buffered)
                      + 2 * n_pad * d_pad)      # hx ping-pong scratch
    vmem_limit = int(max(2 * vmem_bytes, 16 * 1024 * 1024))

    kern = functools.partial(_encoder_kernel, tm=tm, apply_ff=ff,
                             compute_dtype=compute_dtype)

    out_padded = pl.pallas_call(
        kern,
        out_shape=jax.ShapeDtypeStruct((n_pad, d_pad), jnp.float32),
        grid_spec=pltpu.PrefetchScalarGridSpec(
            num_scalar_prefetch=0,
            grid=(num_layers, n_tiles),
            in_specs=[
                pl.BlockSpec((tm, n_pad), lambda s, t: (t, 0)),            # adj row tile
                pl.BlockSpec((n_pad, d_pad), lambda s, t: (0, 0)),         # feat (resident)
                pl.BlockSpec((None, d_pad, d_pad), lambda s, t: (s, 0, 0)),  # W_s
                pl.BlockSpec((None, 1, d_pad), lambda s, t: (s, 0, 0)),      # b_s
                pl.BlockSpec((4, d_pad, d_pad), lambda s, t: (0, 0, 0)),     # FF weights
                pl.BlockSpec((4, 1, d_pad), lambda s, t: (0, 0, 0)),         # FF biases
            ],
            out_specs=pl.BlockSpec((tm, d_pad), lambda s, t: (t, 0)),
            scratch_shapes=[pltpu.VMEM((2, n_pad, d_pad), jnp.float32)],
        ),
        compiler_params=pltpu.CompilerParams(
            # Row-tile axis must be "arbitrary": layer s+1 reads all tiles of layer s.
            dimension_semantics=("arbitrary", "arbitrary"),
            vmem_limit_bytes=vmem_limit,
        ),
        cost_estimate=cost,
    )(adj_p, feat_p, wg, bg, wf, bf)

    return out_padded[:n, :d_out]


# ----------------------------------------------------------------------------- params
def _xavier_uniform(key, fan_in, fan_out):
    bound = jnp.sqrt(6.0 / (fan_in + fan_out))
    return jax.random.uniform(key, (fan_in, fan_out), jnp.float32, -bound, bound)


def init_encoder_params(key, dimensions):
    """GCN layer weights + FF (local_d) weights. Biases start at 0 (init_emb)."""
    keys = jax.random.split(key, 16)
    ki = iter(keys)

    gcn_params = []
    for i in range(1, len(dimensions)):
        w = _xavier_uniform(next(ki), dimensions[i - 1], dimensions[i])
        b = jnp.zeros((1, dimensions[i]), jnp.float32)
        gcn_params.append((w, b))

    d = dimensions[-1]
    ff_params = []
    for _ in range(4):  # three block linears + one shortcut linear
        ff_params.append(_xavier_uniform(next(ki), d, d))
        ff_params.append(jnp.zeros((1, d), jnp.float32))
    return gcn_params, tuple(ff_params)


def normalized_adjacency(key, n):
    """Symmetric normalized adjacency D^-1/2 (A + I) D^-1/2 of a random graph."""
    a = (jax.random.uniform(key, (n, n)) < 0.3).astype(jnp.float32)
    a = jnp.maximum(a, a.T)
    a = a + jnp.eye(n, dtype=jnp.float32)
    deg = jnp.sum(a, axis=1)
    d_inv_sqrt = 1.0 / jnp.sqrt(deg)
    return a * d_inv_sqrt[:, None] * d_inv_sqrt[None, :]


# ----------------------------------------------------------------------------- reference
def encoder_forward_ref(feat, adj, gcn_params, ff_params, ff=True):
    hx = feat
    n_layers = len(gcn_params)
    for i, (w, b) in enumerate(gcn_params):
        out = adj @ (hx @ w) + b
        hx = jnp.maximum(out, 0.0) if i < n_layers - 1 else out
    if ff:
        w1, b1, w2, b2, w3, b3, ws, bs = ff_params
        h = jnp.maximum(hx @ w1 + b1, 0.0)
        h = jnp.maximum(h @ w2 + b2, 0.0)
        h = jnp.maximum(h @ w3 + b3, 0.0)
        hx = h + (hx @ ws + bs)
    return hx


# ----------------------------------------------------------------------------- main
if __name__ == "__main__":
    key = jax.random.PRNGKey(0)
    k_feat, k_adj, k_par = jax.random.split(key, 3)

    node_size = 16
    dimensions = [32, 32, 32]  # input dim, hidden dim, output dim -> 2 GCN layers

    feat = jax.random.normal(k_feat, (node_size, dimensions[0]), jnp.float32)
    adj = normalized_adjacency(k_adj, node_size)
    gcn_params, ff_params = init_encoder_params(k_par, dimensions)

    # f32 operands for the correctness check; pass compute_dtype=jnp.bfloat16 on
    # v6e/v7x to halve adj DMA bytes and double MXU throughput (f32 accumulation kept).
    out = encoder_forward(feat, adj, gcn_params, ff_params, ff=True)
    out = jax.block_until_ready(out)

    ref = encoder_forward_ref(feat, adj, gcn_params, ff_params, ff=True)
    assert out.shape == (node_size, dimensions[-1])
    assert jnp.allclose(out, ref, atol=1e-4, rtol=1e-4), float(jnp.max(jnp.abs(out - ref)))

    print("KERNEL_OK")
</pallas_src>

<mosaic_0001>
module attributes {stable_mosaic.version = 11 : i64} {
  func.func @_encoder_kernel(%arg0: i32, %arg1: i32, %arg2: memref<128x128xf32, #tpu.memory_space<vmem>>, %arg3: memref<128x128xf32, #tpu.memory_space<vmem>>, %arg4: memref<1x128x128xf32, #tpu.memory_space<vmem>>, %arg5: memref<1x1x128xf32, #tpu.memory_space<vmem>>, %arg6: memref<4x128x128xf32, #tpu.memory_space<vmem>>, %arg7: memref<4x1x128xf32, #tpu.memory_space<vmem>>, %arg8: memref<128x128xf32, #tpu.memory_space<vmem>>, %arg9: memref<2x128x128xf32, #tpu.memory_space<vmem>>) attributes {dimension_semantics = [#tpu.dimension_semantics<arbitrary>, #tpu.dimension_semantics<arbitrary>], iteration_bounds = array<i64: 2, 1>, scalar_prefetch = 0 : i64, scratch_operands = 1 : i64, tpu.core_type = #tpu.core_type<tc>, window_params = [{transform_indices = @transform_0, window_bounds = array<i64: 128, 128>}, {pipeline_mode = #tpu.pipeline_mode<synchronous>, transform_indices = @transform_1, window_bounds = array<i64: 128, 128>}, {transform_indices = @transform_2, window_bounds = array<i64: 1, 128, 128>}, {transform_indices = @transform_3, window_bounds = array<i64: 1, 1, 128>}, {pipeline_mode = #tpu.pipeline_mode<synchronous>, transform_indices = @transform_4, window_bounds = array<i64: 4, 128, 128>}, {pipeline_mode = #tpu.pipeline_mode<synchronous>, transform_indices = @transform_5, window_bounds = array<i64: 4, 1, 128>}, {transform_indices = @transform_6, window_bounds = array<i64: 128, 128>}]} {
    %c0_i32 = arith.constant 0 : i32
    %0 = arith.cmpi eq, %arg0, %c0_i32 : i32
    %c0_i32_0 = arith.constant 0 : i32
    %1 = arith.cmpi eq, %arg1, %c0_i32_0 : i32
    %2 = arith.andi %0, %1 : i1
    %3 = arith.extui %2 : i1 to i32
    %c0_i32_1 = arith.constant 0 : i32
    %4 = arith.cmpi ne, %3, %c0_i32_1 : i32
    scf.if %4 {
      %c0_26 = arith.constant 0 : index
      %c0_27 = arith.constant 0 : index
      %44 = vector.load %arg3[%c0_26, %c0_27] : memref<128x128xf32, #tpu.memory_space<vmem>>, vector<128x128xf32>
      %c0_28 = arith.constant 0 : index
      %c0_29 = arith.constant 0 : index
      %c0_30 = arith.constant 0 : index
      %45 = vector.load %arg9[%c0_28, %c0_29, %c0_30] : memref<2x128x128xf32, #tpu.memory_space<vmem>>, vector<1x128x128xf32>
      %46 = vector.shape_cast %45 : vector<1x128x128xf32> to vector<128x128xf32>
      %47 = vector.shape_cast %44 : vector<128x128xf32> to vector<1x128x128xf32>
      tpu.vector_store %arg9[%c0_28, %c0_29, %c0_30], %47 {strides = array<i32>} : memref<2x128x128xf32, #tpu.memory_space<vmem>>, vector<1x128x128xf32>,
    } else {
    }
    %c2_i32 = arith.constant 2 : i32
    %c0_i32_2 = arith.constant 0 : i32
    %5 = arith.cmpi eq, %c2_i32, %c0_i32_2 : i32
    %c1_i32 = arith.constant 1 : i32
    %6 = arith.select %5, %c1_i32, %c2_i32 : i32
    %7 = arith.remsi %arg0, %6 : i32
    %c0_i32_3 = arith.constant 0 : i32
    %8 = arith.cmpi ne, %7, %c0_i32_3 : i32
    %c0_i32_4 = arith.constant 0 : i32
    %9 = arith.cmpi slt, %7, %c0_i32_4 : i32
    %c0_i32_5 = arith.constant 0 : i32
    %10 = arith.cmpi slt, %6, %c0_i32_5 : i32
    %11 = arith.xori %9, %10 : i1
    %12 = arith.andi %11, %8 : i1
    %13 = arith.addi %7, %6 : i32
    %14 = arith.select %12, %13, %7 : i32
    %c1_i32_6 = arith.constant 1 : i32
    %15 = arith.addi %arg0, %c1_i32_6 : i32
    %c2_i32_7 = arith.constant 2 : i32
    %c0_i32_8 = arith.constant 0 : i32
    %16 = arith.cmpi eq, %c2_i32_7, %c0_i32_8 : i32
    %c1_i32_9 = arith.constant 1 : i32
    %17 = arith.select %16, %c1_i32_9, %c2_i32_7 : i32
    %18 = arith.remsi %15, %17 : i32
    %c0_i32_10 = arith.constant 0 : i32
    %19 = arith.cmpi ne, %18, %c0_i32_10 : i32
    %c0_i32_11 = arith.constant 0 : i32
    %20 = arith.cmpi slt, %18, %c0_i32_11 : i32
    %c0_i32_12 = arith.constant 0 : i32
    %21 = arith.cmpi slt, %17, %c0_i32_12 : i32
    %22 = arith.xori %20, %21 : i1
    %23 = arith.andi %22, %19 : i1
    %24 = arith.addi %18, %17 : i32
    %25 = arith.select %23, %24, %18 : i32
    %c0 = arith.constant 0 : index
    %c0_13 = arith.constant 0 : index
    %26 = vector.load %arg2[%c0, %c0_13] : memref<128x128xf32, #tpu.memory_space<vmem>>, vector<128x128xf32>
    %27 = arith.index_cast %14 : i32 to index
    %c0_14 = arith.constant 0 : index
    %c0_15 = arith.constant 0 : index
    %28 = vector.load %arg9[%27, %c0_14, %c0_15] : memref<2x128x128xf32, #tpu.memory_space<vmem>>, vector<1x128x128xf32>
    %29 = vector.shape_cast %28 : vector<1x128x128xf32> to vector<128x128xf32>
    %cst = arith.constant dense<0.000000e+00> : vector<128x128xf32>
    %30 = tpu.matmul %26, %29, %cst {dimension_numbers = #tpu.dot_dimension_numbers<[1], [0], [0], [1], [0, 0, 1, 1], [], []>} : vector<128x128xf32>, vector<128x128xf32>, vector<128x128xf32> -> vector<128x128xf32>
    %c0_16 = arith.constant 0 : index
    %c0_17 = arith.constant 0 : index
    %c0_18 = arith.constant 0 : index
    %31 = vector.load %arg4[%c0_16, %c0_17, %c0_18] : memref<1x128x128xf32, #tpu.memory_space<vmem>>, vector<1x128x128xf32>
    %32 = vector.shape_cast %31 : vector<1x128x128xf32> to vector<128x128xf32>
    %cst_19 = arith.constant dense<0.000000e+00> : vector<128x128xf32>
    %33 = tpu.matmul %30, %32, %cst_19 {dimension_numbers = #tpu.dot_dimension_numbers<[1], [0], [0], [1], [0, 0, 1, 1], [], []>} : vector<128x128xf32>, vector<128x128xf32>, vector<128x128xf32> -> vector<128x128xf32>
    %c0_20 = arith.constant 0 : index
    %c0_21 = arith.constant 0 : index
    %c0_22 = arith.constant 0 : index
    %34 = vector.load %arg5[%c0_20, %c0_21, %c0_22] : memref<1x1x128xf32, #tpu.memory_space<vmem>>, vector<1x1x128xf32>
    %35 = vector.shape_cast %34 : vector<1x1x128xf32> to vector<1x128xf32>
    %36 = vector.broadcast %35 : vector<1x128xf32> to vector<128x128xf32>
    %37 = arith.addf %33, %36 : vector<128x128xf32>
    %c1_i32_23 = arith.constant 1 : i32
    %38 = arith.cmpi eq, %arg0, %c1_i32_23 : i32
    %true = arith.constant true
    %39 = arith.xori %38, %true : i1
    %40 = arith.extui %39 : i1 to i32
    %c0_i32_24 = arith.constant 0 : i32
    %41 = arith.cmpi ne, %40, %c0_i32_24 : i32
    scf.if %41 {
      %cst_26 = arith.constant 0.000000e+00 : f32
      %44 = vector.broadcast %cst_26 : f32 to vector<128x128xf32>
      %45 = arith.maximumf %37, %44 : vector<128x128xf32>
      %c128_i32 = arith.constant 128 : i32
      %46 = arith.muli %arg1, %c128_i32 : i32
      %47 = tpu.assume_multiple %46, 128 : i32
      %48 = arith.index_cast %25 : i32 to index
      %49 = arith.index_cast %47 : i32 to index
      %c0_27 = arith.constant 0 : index
      %50 = vector.load %arg9[%48, %49, %c0_27] : memref<2x128x128xf32, #tpu.memory_space<vmem>>, vector<1x128x128xf32>
      %51 = vector.shape_cast %50 : vector<1x128x128xf32> to vector<128x128xf32>
      %52 = vector.shape_cast %45 : vector<128x128xf32> to vector<1x128x128xf32>
      tpu.vector_store %arg9[%48, %49, %c0_27], %52 {strides = array<i32>} : memref<2x128x128xf32, #tpu.memory_space<vmem>>, vector<1x128x128xf32>,
      %c0_28 = arith.constant 0 : index
      %c0_29 = arith.constant 0 : index
      %53 = vector.load %arg8[%c0_28, %c0_29] : memref<128x128xf32, #tpu.memory_space<vmem>>, vector<128x128xf32>
      tpu.vector_store %arg8[%c0_28, %c0_29], %45 {strides = array<i32>} : memref<128x128xf32, #tpu.memory_space<vmem>>, vector<128x128xf32>,
    } else {
    }
    %42 = arith.extui %38 : i1 to i32
    %c0_i32_25 = arith.constant 0 : i32
    %43 = arith.cmpi ne, %42, %c0_i32_25 : i32
    scf.if %43 {
      %c3 = arith.constant 3 : index
      %c0_26 = arith.constant 0 : index
      %c0_27 = arith.constant 0 : index
      %44 = vector.load %arg6[%c3, %c0_26, %c0_27] : memref<4x128x128xf32, #tpu.memory_space<vmem>>, vector<1x128x128xf32>
      %45 = vector.shape_cast %44 : vector<1x128x128xf32> to vector<128x128xf32>
      %cst_28 = arith.constant dense<0.000000e+00> : vector<128x128xf32>
      %46 = tpu.matmul %37, %45, %cst_28 {dimension_numbers = #tpu.dot_dimension_numbers<[1], [0], [0], [1], [0, 0, 1, 1], [], []>} : vector<128x128xf32>, vector<128x128xf32>, vector<128x128xf32> -> vector<128x128xf32>
      %c3_29 = arith.constant 3 : index
      %c0_30 = arith.constant 0 : index
      %c0_31 = arith.constant 0 : index
      %47 = vector.load %arg7[%c3_29, %c0_30, %c0_31] : memref<4x1x128xf32, #tpu.memory_space<vmem>>, vector<1x1x128xf32>
      %48 = vector.shape_cast %47 : vector<1x1x128xf32> to vector<1x128xf32>
      %49 = vector.broadcast %48 : vector<1x128xf32> to vector<128x128xf32>
      %50 = arith.addf %46, %49 : vector<128x128xf32>
      %c0_32 = arith.constant 0 : index
      %c0_33 = arith.constant 0 : index
      %c0_34 = arith.constant 0 : index
      %51 = vector.load %arg6[%c0_32, %c0_33, %c0_34] : memref<4x128x128xf32, #tpu.memory_space<vmem>>, vector<1x128x128xf32>
      %52 = vector.shape_cast %51 : vector<1x128x128xf32> to vector<128x128xf32>
      %cst_35 = arith.constant dense<0.000000e+00> : vector<128x128xf32>
      %53 = tpu.matmul %37, %52, %cst_35 {dimension_numbers = #tpu.dot_dimension_numbers<[1], [0], [0], [1], [0, 0, 1, 1], [], []>} : vector<128x128xf32>, vector<128x128xf32>, vector<128x128xf32> -> vector<128x128xf32>
      %c0_36 = arith.constant 0 : index
      %c0_37 = arith.constant 0 : index
      %c0_38 = arith.constant 0 : index
      %54 = vector.load %arg7[%c0_36, %c0_37, %c0_38] : memref<4x1x128xf32, #tpu.memory_space<vmem>>, vector<1x1x128xf32>
      %55 = vector.shape_cast %54 : vector<1x1x128xf32> to vector<1x128xf32>
      %56 = vector.broadcast %55 : vector<1x128xf32> to vector<128x128xf32>
      %57 = arith.addf %53, %56 : vector<128x128xf32>
      %cst_39 = arith.constant 0.000000e+00 : f32
      %58 = vector.broadcast %cst_39 : f32 to vector<128x128xf32>
      %59 = arith.maximumf %57, %58 : vector<128x128xf32>
      %c1 = arith.constant 1 : index
      %c0_40 = arith.constant 0 : index
      %c0_41 = arith.constant 0 : index
      %60 = vector.load %arg6[%c1, %c0_40, %c0_41] : memref<4x128x128xf32, #tpu.memory_space<vmem>>, vector<1x128x128xf32>
      %61 = vector.shape_cast %60 : vector<1x128x128xf32> to vector<128x128xf32>
      %cst_42 = arith.constant dense<0.000000e+00> : vector<128x128xf32>
      %62 = tpu.matmul %59, %61, %cst_42 {dimension_numbers = #tpu.dot_dimension_numbers<[1], [0], [0], [1], [0, 0, 1, 1], [], []>} : vector<128x128xf32>, vector<128x128xf32>, vector<128x128xf32> -> vector<128x128xf32>
      %c1_43 = arith.constant 1 : index
      %c0_44 = arith.constant 0 : index
      %c0_45 = arith.constant 0 : index
      %63 = vector.load %arg7[%c1_43, %c0_44, %c0_45] : memref<4x1x128xf32, #tpu.memory_space<vmem>>, vector<1x1x128xf32>
      %64 = vector.shape_cast %63 : vector<1x1x128xf32> to vector<1x128xf32>
      %65 = vector.broadcast %64 : vector<1x128xf32> to vector<128x128xf32>
      %66 = arith.addf %62, %65 : vector<128x128xf32>
      %cst_46 = arith.constant 0.000000e+00 : f32
      %67 = vector.broadcast %cst_46 : f32 to vector<128x128xf32>
      %68 = arith.maximumf %66, %67 : vector<128x128xf32>
      %c2 = arith.constant 2 : index
      %c0_47 = arith.constant 0 : index
      %c0_48 = arith.constant 0 : index
      %69 = vector.load %arg6[%c2, %c0_47, %c0_48] : memref<4x128x128xf32, #tpu.memory_space<vmem>>, vector<1x128x128xf32>
      %70 = vector.shape_cast %69 : vector<1x128x128xf32> to vector<128x128xf32>
      %cst_49 = arith.constant dense<0.000000e+00> : vector<128x128xf32>
      %71 = tpu.matmul %68, %70, %cst_49 {dimension_numbers = #tpu.dot_dimension_numbers<[1], [0], [0], [1], [0, 0, 1, 1], [], []>} : vector<128x128xf32>, vector<128x128xf32>, vector<128x128xf32> -> vector<128x128xf32>
      %c2_50 = arith.constant 2 : index
      %c0_51 = arith.constant 0 : index
      %c0_52 = arith.constant 0 : index
      %72 = vector.load %arg7[%c2_50, %c0_51, %c0_52] : memref<4x1x128xf32, #tpu.memory_space<vmem>>, vector<1x1x128xf32>
      %73 = vector.shape_cast %72 : vector<1x1x128xf32> to vector<1x128xf32>
      %74 = vector.broadcast %73 : vector<1x128xf32> to vector<128x128xf32>
      %75 = arith.addf %71, %74 : vector<128x128xf32>
      %cst_53 = arith.constant 0.000000e+00 : f32
      %76 = vector.broadcast %cst_53 : f32 to vector<128x128xf32>
      %77 = arith.maximumf %75, %76 : vector<128x128xf32>
      %78 = arith.addf %50, %77 : vector<128x128xf32>
      %c0_54 = arith.constant 0 : index
      %c0_55 = arith.constant 0 : index
      %79 = vector.load %arg8[%c0_54, %c0_55] : memref<128x128xf32, #tpu.memory_space<vmem>>, vector<128x128xf32>
      tpu.vector_store %arg8[%c0_54, %c0_55], %78 {strides = array<i32>} : memref<128x128xf32, #tpu.memory_space<vmem>>, vector<128x128xf32>,
    } else {
    }
    return
  }
  func.func @transform_0(%arg0: i32, %arg1: i32) -> (i32, i32) {
    %c0_i32 = arith.constant 0 : i32
    %c0_i32_0 = arith.constant 0 : i32
    return %arg1, %c0_i32 : i32, i32
  }
  func.func @transform_1(%arg0: i32, %arg1: i32) -> (i32, i32) {
    %c0_i32 = arith.constant 0 : i32
    %c0_i32_0 = arith.constant 0 : i32
    %c0_i32_1 = arith.constant 0 : i32
    return %c0_i32, %c0_i32_0 : i32, i32
  }
  func.func @transform_2(%arg0: i32, %arg1: i32) -> (i32, i32, i32) {
    %c0_i32 = arith.constant 0 : i32
    %c0_i32_0 = arith.constant 0 : i32
    %c0_i32_1 = arith.constant 0 : i32
    return %arg0, %c0_i32, %c0_i32_0 : i32, i32, i32
  }
  func.func @transform_3(%arg0: i32, %arg1: i32) -> (i32, i32, i32) {
    %c0_i32 = arith.constant 0 : i32
    %c0_i32_0 = arith.constant 0 : i32
    %c0_i32_1 = arith.constant 0 : i32
    return %arg0, %c0_i32, %c0_i32_0 : i32, i32, i32
  }
  func.func @transform_4(%arg0: i32, %arg1: i32) -> (i32, i32, i32) {
    %c0_i32 = arith.constant 0 : i32
    %c0_i32_0 = arith.constant 0 : i32
    %c0_i32_1 = arith.constant 0 : i32
    %c0_i32_2 = arith.constant 0 : i32
    return %c0_i32, %c0_i32_0, %c0_i32_1 : i32, i32, i32
  }
  func.func @transform_5(%arg0: i32, %arg1: i32) -> (i32, i32, i32) {
    %c0_i32 = arith.constant 0 : i32
    %c0_i32_0 = arith.constant 0 : i32
    %c0_i32_1 = arith.constant 0 : i32
    %c0_i32_2 = arith.constant 0 : i32
    return %c0_i32, %c0_i32_0, %c0_i32_1 : i32, i32, i32
  }
  func.func @transform_6(%arg0: i32, %arg1: i32) -> (i32, i32) {
    %c0_i32 = arith.constant 0 : i32
    %c0_i32_0 = arith.constant 0 : i32
    return %arg1, %c0_i32 : i32, i32
  }
}

</mosaic_0001>

<bundles_post_ra>
// kernel: tpu_custom_call.1
= control target key start
LH: loop header
LB: loop body
LE: loop exit
PB: predicated region body
PF: predicated region fallthrough
CT: control target
= control target key end

     0   :  { %s2080_s0 = inlined_call_operand.hbm [shape: f32[128,128], index: 0, kind: input, shape index: {}]   ;;  %s2081_s1 = inlined_call_operand.hbm [shape: f32[128,128], index: 1, kind: input, shape index: {}]   ;;  %s2082_s2 = inlined_call_operand.hbm [shape: f32[2,128,128], index: 2, kind: input, shape index: {}]   ;;  %s2083_s3 = inlined_call_operand.hbm [shape: f32[2,1,128], index: 3, kind: input, shape index: {}]   ;;  %s2084_s4 = inlined_call_operand.hbm [shape: f32[4,128,128], index: 4, kind: input, shape index: {}]   ;;  %s2085_s5 = inlined_call_operand.vmem [shape: f32[4,1,128], index: 5, kind: input, shape index: {}]   ;;  %s2086_s6 = inlined_call_operand.hbm [shape: f32[128,128], index: 6, kind: output, shape index: {}]  }
   0x1   :  { %2091 = sst [smem:[#allocation17_spill]] %s2080_s0 }
   0x2   :  { %2092 = sst [smem:[#allocation18_spill]] %s2081_s1 }
   0x3   :  { %2093 = sst [smem:[#allocation19_spill]] %s2082_s2 }
   0x4   :  { %2094 = sst [smem:[#allocation20_spill]] %s2084_s4 }
   0x5   :  { %11 = vsyncpa [#allocation4], 0 }
   0x6   :  { %12 = vsyncpa [#allocation7], 0 }
   0x7   :  { %13 = vsyncpa [#allocation5], 0  ;;  %s1688_s21 = smov 0   ;;  %s1690_s22 = smov 0  }
   0x8   :  { %s1692_s23 = smov 0   ;;  %s1694_s24 = smov 0  }
   0x9   :  { %s1696_s25 = smov 0   ;;  %s1698_s26 = smov 0  }
   0xa LB: > { %s1717_s27 = sadd.s32 4294967295, %s1643_s26   ;;  %p98_p0 = scmp.ne.s32.totalorder %s1627_s22, %s1623_s21  ;;  %s1643_s26 = sphi %s1698_s26, %s19_s26   ;;  %s1639_s25 = sphi %s1696_s25, %s2110_s25   ;;  %s1635_s24 = sphi %s1694_s24, %s2109_s24   ;;  %s1631_s23 = sphi %s1692_s23, %s2108_s23   ;;  %s1627_s22 = sphi %s1690_s22, %s2107_s22   ;;  %s1623_s21 = sphi %s1688_s21, %s2106_s21  }
   0xb   : > { %p99_p1 = scmp.eq.s32.totalorder %s1717_s27, 0  ;;  %p1227_p2 = scmp.ge.s32.totalorder %s1643_s26, 1 }
   0xc   : > { %p203_p3 = scmp.lt.s32.totalorder %s1643_s26, 3  ;;  %s2096_s0 = sld [smem:[#allocation17_spill]] }
   0xd   : > { %p1725_p4 = por %p99_p1, %p98_p0  ;;  %s1645_s9 = smov [#allocation3]  }
   0xe   : > { %p1732_p5 = pnand %p1227_p2, %p203_p3  ;;  %s219_s10 = sshll.u32 %s1645_s9, 4  ;;  %s220_s10 = int_to_ptr.vmem [resolvable:$true] %s219_s10 }
   0xf   : > { %s2099_s1 = sld [smem:[#allocation18_spill]]  ;;  %s2087_s15 = smov 128  }
  0x10   : > { %p1312_p6 = pneg %p1732_p5  ;;  %s2089_s16 = smov 8  }
  0x11   : > { %s1648_s17 = smov [#allocation6]   ;;  %s31_s19 = sadd.s32 1, %s1639_s25 }
  0x12   : > { %s217_s7 = sshll.u32 %s2096_s0, 4  ;;  %p1740_p7 = pnand %p1312_p6, %p99_p1  ;;  %s218_s7 = int_to_ptr.hbm [resolvable:$true] %s217_s7 }
  0x13   : > { %s233_s18 = sshll.u32 %s1648_s17, 4  ;;  %s85_s20 = sadd.s32 1, %s1631_s23  ;;  %s234_s18 = int_to_ptr.vmem [resolvable:$true] %s233_s18 }
  0x14   : > { %1315 = dma.hbm_to_vmem [thread:$0]  (!%p1740_p7), %s218_s7, 2048, %s220_s10, [#allocation4], %s2087_s15, %s2087_s15, %s2089_s16  }
  0x15   : > { %s231_s14 = sshll.u32 %s2099_s1, 4  ;;  %p33_p8 = scmp.ge.s32.totalorder %s31_s19, 2  ;;  %s232_s14 = int_to_ptr.hbm [resolvable:$true] %s231_s14 }
  0x16   : > { %1318 = dma.hbm_to_vmem [thread:$0]  (!%p1740_p7), %s232_s14, 2048, %s234_s18, [#allocation7], %s2087_s15, %s2087_s15, %s2089_s16  }
  0x17   : > { %p92_p9 = scmp.ne.s32.totalorder %s1631_s23, %s1627_s22  ;;  %p93_p10 = scmp.eq.s32.totalorder %s1643_s26, 0 }
  0x18   : > { %p1332_p11 = scmp.lt.s32.totalorder %s1643_s26, 2  ;;  %s2112_s19 = smov (%p33_p8, %s31_s19), 0 }
  0x19   : > { %p1765_p12 = por %p93_p10, %p92_p9  ;;  %s264_s29 = sand.u32 1, %s1643_s26  }
  0x1a   : > { %s82_s30 = ssub.s32 %s1639_s25, %s2112_s19  ;;  %s266_s7 = sand.u32 1, %s1631_s23  }
  0x1b   : > { %p83_p13 = scmp.eq.s32.totalorder %s82_s30, 0  ;;  %s1232_s9 = sshll.u32 %s266_s7, 7 }
  0x1c   : > { %s1258_s10 = sshll.u32 %s1639_s25, 7  ;;  %s2101_s2 = sld [smem:[#allocation19_spill]] }
  0x1d   : > { %s1775_s12 = scalar_select %p83_p13, %s1631_s23, %s85_s20  }
  0x1e   : > { %s268_s15 = scalar_lea.vmem [#allocation8], %s1232_s9  ;;  %p1784_p0 = pnand %p1332_p11, %p1765_p12 }
  0x1f   : > { %s276_s16 = sshll.u32 %s268_s15, 4  ;;  %s2103_s4 = sld [smem:[#allocation20_spill]]  ;;  %s277_s16 = int_to_ptr.vmem [resolvable:$true] %s276_s16 }
  0x20   : > { %s1649_s13 = smov [#allocation10]   ;;  %s265_s14 = scalar_lea.sflag [#allocation4], %s264_s29 }
  0x21   : > { %s2104_s15 = smov 8   ;;  %s2105_s9 = smov 128  }
  0x22   : > { %s273_s17 = scalar_lea.hbm %s2101_s2, %s1258_s10  ;;  %s247_s10 = sshll.u32 %s1649_s13, 4  ;;  %s248_s10 = int_to_ptr.vmem [resolvable:$true] %s247_s10 }
  0x23   : > { %s274_s18 = sshll.u32 %s273_s17, 4  ;;  %s292_s1 = scalar_lea.hbm %s2083_s3, %s1639_s25  ;;  %s275_s18 = int_to_ptr.hbm [resolvable:$true] %s274_s18 }
  0x24   : > { %1325 = dma.hbm_to_vmem [thread:$0]  (!%p1784_p0), %s275_s18, 2048, %s277_s16, %s265_s14, %s2105_s9, %s2105_s9, %s2104_s15  }
  0x25   : > { %s245_s20 = sshll.u32 %s2103_s4, 4  ;;  %s289_s17 = scalar_lea.vmem [#allocation9], %s266_s7  ;;  %s246_s20 = int_to_ptr.hbm [resolvable:$true] %s245_s20 }
  0x26   : > { %1321 = dma.hbm_to_vmem [thread:$0]  (!%p1740_p7), %s246_s20, 8192, %s248_s10, [#allocation7], %s2105_s9, %s2105_s9, %s2104_s15  }
  0x27   : > { %s296_s2 = sshll.u32 %s289_s17, 4  ;;  %s294_s4 = sshll.u32 %s292_s1, 4  ;;  %s297_s2 = int_to_ptr.vmem [resolvable:$true] %s296_s2  ;;  %s295_s4 = int_to_ptr.hbm [resolvable:$true] %s294_s4 }
  0x28   : > { %1328 = dma.hbm_to_vmem [thread:$0]  (!%p1784_p0), %s295_s4, 16, %s297_s2, %s265_s14  }
  0x29   : > { %305 = sbr.rel (%p1732_p5) target bundleno = 1040 (0x410), region = 44 }
  0x2e   : > { %1602 = dma.done.wait (%p99_p1), [#allocation4], 2048  }
  0x2f   : > { %1604 = vsyncadd (%p99_p1), [#allocation4], 4294965248 }
  0x30   : > { %1606 = dma.done.wait (%p99_p1), [#allocation7], 2048  }
  0x31   : > { %1608 = vsyncadd (%p99_p1), [#allocation7], 4294965248  ;;  %s317_s11 = sand.u32 1, %s1717_s27   ;;  %s319_s2 = sand.u32 1, %s1627_s22  }
  0x32   : > { %s1238_s4 = sshll.u32 %s319_s2, 7  ;;  %s318_s8 = scalar_lea.sflag [#allocation4], %s317_s11 }
  0x33   : > { %s1819_s16 = scalar_lea.vmem [#allocation8], %s1238_s4 }
  0x34   : > { %1610 = dma.done.wait (%p1725_p4), %s318_s8, 2064  }
  0x35   : > { %1612 = vsyncadd (%p1725_p4), %s318_s8, 4294965232  ;;  %s1825_s29 = scalar_lea.vmem [#allocation9], %s319_s2 }
  0x36   : > { %1614 = dma.done.wait (%p99_p1), [#allocation7], 8192  }
  0x37   : > { %1616 = vsyncadd (%p99_p1), [#allocation7], 4294959104  ;;  %p366_p2 = scmp.eq.s32.totalorder %s1635_s24, 0 }
  0x38   : > { %v372_v0 = vld [vmem:[#allocation6] sm:$0xff] (%p366_p2)  ;;  %v373_v1 = vld [vmem:[#allocation6 + $0x8] sm:$0xff] (%p366_p2)  ;;  %v374_v2 = vld [vmem:[#allocation6 + $0x10] sm:$0xff] (%p366_p2) }
  0x39   : > { %371 = sbr.rel (!%p366_p2) target bundleno = 73 (0x49), region = 68  ;;  %388 = vst [vmem:[#allocation2] sm:$0xff] (%p366_p2), %v372_v0  ;;  %v375_v3 = vld [vmem:[#allocation6 + $0x18] sm:$0xff] (%p366_p2)  ;;  %v376_v4 = vld [vmem:[#allocation6 + $0x20] sm:$0xff] (%p366_p2)  ;;  %v377_v5 = vld [vmem:[#allocation6 + $0x28] sm:$0xff] (%p366_p2) }
  0x3a   : > { %389 = vst [vmem:[#allocation2 + $0x8] sm:$0xff] (%p366_p2), %v373_v1  ;;  %v378_v6 = vld [vmem:[#allocation6 + $0x30] sm:$0xff] (%p366_p2)  ;;  %v379_v7 = vld [vmem:[#allocation6 + $0x38] sm:$0xff] (%p366_p2)  ;;  %v380_v8 = vld [vmem:[#allocation6 + $0x40] sm:$0xff] (%p366_p2) }
  0x3b   : > { %390 = vst [vmem:[#allocation2 + $0x10] sm:$0xff] (%p366_p2), %v374_v2  ;;  %v381_v9 = vld [vmem:[#allocation6 + $0x48] sm:$0xff] (%p366_p2)  ;;  %v382_v10 = vld [vmem:[#allocation6 + $0x50] sm:$0xff] (%p366_p2)  ;;  %v383_v11 = vld [vmem:[#allocation6 + $0x58] sm:$0xff] (%p366_p2) }
  0x3c   : > { %391 = vst [vmem:[#allocation2 + $0x18] sm:$0xff] (%p366_p2), %v375_v3  ;;  %v384_v12 = vld [vmem:[#allocation6 + $0x60] sm:$0xff] (%p366_p2)  ;;  %v385_v13 = vld [vmem:[#allocation6 + $0x68] sm:$0xff] (%p366_p2)  ;;  %v386_v14 = vld [vmem:[#allocation6 + $0x70] sm:$0xff] (%p366_p2) }
  0x3d   : > { %392 = vst [vmem:[#allocation2 + $0x20] sm:$0xff] (%p366_p2), %v376_v4  ;;  %v387_v15 = vld [vmem:[#allocation6 + $0x78] sm:$0xff] (%p366_p2) }
  0x3e   : > { %393 = vst [vmem:[#allocation2 + $0x28] sm:$0xff] %v377_v5 }
  0x3f   : > { %394 = vst [vmem:[#allocation2 + $0x30] sm:$0xff] %v378_v6 }
  0x40   : > { %395 = vst [vmem:[#allocation2 + $0x38] sm:$0xff] %v379_v7 }
  0x41   : > { %396 = vst [vmem:[#allocation2 + $0x40] sm:$0xff] %v380_v8 }
  0x42   : > { %397 = vst [vmem:[#allocation2 + $0x48] sm:$0xff] %v381_v9 }
  0x43   : > { %398 = vst [vmem:[#allocation2 + $0x50] sm:$0xff] %v382_v10 }
  0x44   : > { %399 = vst [vmem:[#allocation2 + $0x58] sm:$0xff] %v383_v11 }
  0x45   : > { %400 = vst [vmem:[#allocation2 + $0x60] sm:$0xff] %v384_v12 }
  0x46   : > { %401 = vst [vmem:[#allocation2 + $0x68] sm:$0xff] %v385_v13 }
  0x47   : > { %402 = vst [vmem:[#allocation2 + $0x70] sm:$0xff] %v386_v14 }
  0x48   : > { %403 = vst [vmem:[#allocation2 + $0x78] sm:$0xff] %v387_v15 }
  0x49 PF: > { %p404_p1 = scmp.lt.s32.totalorder %s1635_s24, 0  ;;  %s405_s28 = ssub.s32 0, %s1635_s24  ;;  %v437_v32 = vld [vmem:[#allocation3 + $0x40] sm:$0xff]  ;;  %v438_v34 = vld [vmem:[#allocation3 + $0x48] sm:$0xff]  ;;  %v439_v36 = vld [vmem:[#allocation3 + $0x50] sm:$0xff] }
  0x4a   : > { %s1241_s7 = smin.u32 %s1635_s24, %s405_s28  ;;  %s416_s18 = sadd.s32 1, %s1635_s24  ;;  %v429_v33 = vld [vmem:[#allocation3] sm:$0xff]  ;;  %v430_v35 = vld [vmem:[#allocation3 + $0x8] sm:$0xff]  ;;  %v431_v37 = vld [vmem:[#allocation3 + $0x10] sm:$0xff] }
  0x4b   : > { %s407_s30 = sand.u32 1, %s1241_s7   ;;  %s418_s13 = ssub.s32 0, %s416_s18  ;;  %v440_v38 = vld [vmem:[#allocation3 + $0x58] sm:$0xff]  ;;  %v542_v41 = vld [vmem:[%s1819_s16 + $0x70] sm:$0xff]  ;;  %v541_v42 = vld [vmem:[%s1819_s16 + $0x68] sm:$0xff] }
  0x4c   : > { %s408_s20 = ssub.s32 0, %s407_s30  ;;  %s1244_s10 = smin.u32 %s418_s13, %s416_s18  ;;  %v432_v39 = vld [vmem:[#allocation3 + $0x18] sm:$0xff]  ;;  %v540_v43 = vld [vmem:[%s1819_s16 + $0x60] sm:$0xff]  ;;  %v538_v47 = vld [vmem:[%s1819_s16 + $0x50] sm:$0xff] }
  0x4d   : > { %s2114_s20 = smov (!%p404_p1, %s408_s20), %s407_s30  ;;  %p417_p4 = scmp.lt.s32.totalorder %s416_s18, 0  ;;  %v543_v40 = vld [vmem:[%s1819_s16 + $0x78] sm:$0xff]  ;;  %v441_v44 = vld [vmem:[#allocation3 + $0x60] sm:$0xff]  ;;  %v537_v48 = vld [vmem:[%s1819_s16 + $0x48] sm:$0xff] }
  0x4e   : > { %p1243_p3 = scmp.lt.s32.totalorder %s2114_s20, 0  ;;  %s414_s14 = sadd.s32 2, %s2114_s20  ;;  %1276 = vmatpush.msra.mxu3 %v543_v40  ;;  %548 = vmatpush.msra.mxu1 %v543_v40  ;;  %v433_v45 = vld [vmem:[#allocation3 + $0x20] sm:$0xff]  ;;  %v539_v46 = vld [vmem:[%s1819_s16 + $0x58] sm:$0xff]  ;;  %v442_v50 = vld [vmem:[#allocation3 + $0x68] sm:$0xff] }
  0x4f   : > { %s420_s15 = sand.u32 1, %s1244_s10   ;;  %v536_v49 = vld [vmem:[%s1819_s16 + $0x40] sm:$0xff]  ;;  %v434_v51 = vld [vmem:[#allocation3 + $0x28] sm:$0xff]  ;;  %v535_v52 = vld [vmem:[%s1819_s16 + $0x38] sm:$0xff]  ;;  %p1248_p6 = scmp.eq.s32.totalorder %s1635_s24, 1 }
  0x50   : > { %s2116_s14 = smov (!%p1243_p3, %s414_s14), %s2114_s20  ;;  %s421_s9 = ssub.s32 0, %s420_s15  ;;  %1277 = vmatpush.msra.mxu3 %v542_v41  ;;  %549 = vmatpush.msra.mxu1 %v542_v41  ;;  %v534_v53 = vld [vmem:[%s1819_s16 + $0x30] sm:$0xff]  ;;  %v533_v54 = vld [vmem:[%s1819_s16 + $0x28] sm:$0xff]  ;;  %v532_v55 = vld [vmem:[%s1819_s16 + $0x20] sm:$0xff] }
  0x51   : > { %s1247_s21 = sshll.u32 %s2116_s14, 7  ;;  %s2118_s9 = smov (!%p417_p4, %s421_s9), %s420_s15  ;;  %v443_v56 = vld [vmem:[#allocation3 + $0x70] sm:$0xff]  ;;  %v531_v58 = vld [vmem:[%s1819_s16 + $0x18] sm:$0xff]  ;;  %v529_v60 = vld [vmem:[%s1819_s16 + $0x8] sm:$0xff] }
  0x52   : > { %s1836_s0 = scalar_lea.vmem [#allocation2], %s1247_s21  ;;  %p1246_p5 = scmp.lt.s32.totalorder %s2118_s9, 0  ;;  %1278 = vmatpush.msra.mxu3 %v541_v42  ;;  %550 = vmatpush.msra.mxu1 %v541_v42  ;;  %v435_v57 = vld [vmem:[#allocation3 + $0x30] sm:$0xff]  ;;  %v444_v61 = vld [vmem:[#allocation3 + $0x78] sm:$0xff]  ;;  %v528_v63 = vld [vmem:[%s1819_s16] sm:$0xff] }
  0x53   : > { %v462_v16 = vld [vmem:[%s1836_s0 + $0x78] sm:$0xff]  ;;  %v461_v17 = vld [vmem:[%s1836_s0 + $0x70] sm:$0xff]  ;;  %v460_v18 = vld [vmem:[%s1836_s0 + $0x68] sm:$0xff]  ;;  %s427_s1 = sadd.s32 2, %s2118_s9 }
  0x54   : > { %1260 = vmatpush.msra.mxu2 %v462_v16  ;;  %463 = vmatpush.msra.mxu0 %v462_v16  ;;  %v459_v19 = vld [vmem:[%s1836_s0 + $0x60] sm:$0xff]  ;;  %s2120_s1 = smov (!%p1246_p5, %s427_s1), %s2118_s9  ;;  %v458_v20 = vld [vmem:[%s1836_s0 + $0x58] sm:$0xff]  ;;  %v457_v21 = vld [vmem:[%s1836_s0 + $0x50] sm:$0xff] }
  0x55   : > { %v456_v22 = vld [vmem:[%s1836_s0 + $0x48] sm:$0xff]  ;;  %v455_v23 = vld [vmem:[%s1836_s0 + $0x40] sm:$0xff]  ;;  %v454_v24 = vld [vmem:[%s1836_s0 + $0x38] sm:$0xff]  ;;  %1279 = vmatpush.msra.mxu3 %v540_v43  ;;  %551 = vmatpush.msra.mxu1 %v540_v43  ;;  %s1249_s17 = sshll.u32 (!%p1248_p6), %s2120_s1, 7 }
  0x56   : > { %1261 = vmatpush.msra.mxu2 %v461_v17  ;;  %464 = vmatpush.msra.mxu0 %v461_v17  ;;  %v453_v25 = vld [vmem:[%s1836_s0 + $0x30] sm:$0xff]  ;;  %v452_v26 = vld [vmem:[%s1836_s0 + $0x28] sm:$0xff]  ;;  %v451_v27 = vld [vmem:[%s1836_s0 + $0x20] sm:$0xff]  ;;  %s1909_s11 = scalar_lea.vmem (!%p1248_p6), [#allocation2], %s1249_s17 }
  0x57   : > { %v450_v28 = vld [vmem:[%s1836_s0 + $0x18] sm:$0xff]  ;;  %v449_v29 = vld [vmem:[%s1836_s0 + $0x10] sm:$0xff]  ;;  %v448_v30 = vld [vmem:[%s1836_s0 + $0x8] sm:$0xff]  ;;  %1280 = vmatpush.msra.mxu3 %v539_v46  ;;  %552 = vmatpush.msra.mxu1 %v539_v46 }
  0x58   : > { %1262 = vmatpush.msra.mxu2 %v460_v18  ;;  %465 = vmatpush.msra.mxu0 %v460_v18  ;;  %v447_v31 = vld [vmem:[%s1836_s0] sm:$0xff]  ;;  %v530_v59 = vld [vmem:[%s1819_s16 + $0x10] sm:$0xff]  ;;  %v436_v62 = vld [vmem:[#allocation3 + $0x38] sm:$0xff] }
  0x59   : > { %1281 = vmatpush.msra.mxu3 %v538_v47  ;;  %553 = vmatpush.msra.mxu1 %v538_v47  ;;  %v1394_v16 = vld [vmem:[%s1825_s29] ss:$0 sm:$0xff] }
  0x5a   : > { %1263 = vmatpush.msra.mxu2 %v459_v19  ;;  %466 = vmatpush.msra.mxu0 %v459_v19 }
  0x5b   : > { %1282 = vmatpush.msra.mxu3 %v537_v48  ;;  %554 = vmatpush.msra.mxu1 %v537_v48 }
  0x5c   : > { %1264 = vmatpush.msra.mxu2 %v458_v20  ;;  %467 = vmatpush.msra.mxu0 %v458_v20 }
  0x5d   : > { %1283 = vmatpush.msra.mxu3 %v536_v49  ;;  %555 = vmatpush.msra.mxu1 %v536_v49 }
  0x5e   : > { %1265 = vmatpush.msra.mxu2 %v457_v21  ;;  %468 = vmatpush.msra.mxu0 %v457_v21 }
  0x5f   : > { %1284 = vmatpush.msra.mxu3 %v535_v52  ;;  %556 = vmatpush.msra.mxu1 %v535_v52 }
  0x60   : > { %1266 = vmatpush.msra.mxu2 %v456_v22  ;;  %469 = vmatpush.msra.mxu0 %v456_v22 }
  0x61   : > { %1285 = vmatpush.msra.mxu3 %v534_v53  ;;  %557 = vmatpush.msra.mxu1 %v534_v53 }
  0x62   : > { %1267 = vmatpush.msra.mxu2 %v455_v23  ;;  %470 = vmatpush.msra.mxu0 %v455_v23 }
  0x63   : > { %1286 = vmatpush.msra.mxu3 %v533_v54  ;;  %558 = vmatpush.msra.mxu1 %v533_v54 }
  0x64   : > { %1268 = vmatpush.msra.mxu2 %v454_v24  ;;  %471 = vmatpush.msra.mxu0 %v454_v24 }
  0x65   : > { %1287 = vmatpush.msra.mxu3 %v532_v55  ;;  %559 = vmatpush.msra.mxu1 %v532_v55 }
  0x66   : > { %1269 = vmatpush.msra.mxu2 %v453_v25  ;;  %472 = vmatpush.msra.mxu0 %v453_v25 }
  0x67   : > { %1288 = vmatpush.msra.mxu3 %v531_v58  ;;  %560 = vmatpush.msra.mxu1 %v531_v58 }
  0x68   : > { %1270 = vmatpush.msra.mxu2 %v452_v26  ;;  %473 = vmatpush.msra.mxu0 %v452_v26 }
  0x69   : > { %1289 = vmatpush.msra.mxu3 %v530_v59  ;;  %561 = vmatpush.msra.mxu1 %v530_v59 }
  0x6a   : > { %1271 = vmatpush.msra.mxu2 %v451_v27  ;;  %474 = vmatpush.msra.mxu0 %v451_v27 }
  0x6b   : > { %1290 = vmatpush.msra.mxu3 %v529_v60  ;;  %562 = vmatpush.msra.mxu1 %v529_v60 }
  0x6c   : > { %1272 = vmatpush.msra.mxu2 %v450_v28  ;;  %475 = vmatpush.msra.mxu0 %v450_v28 }
  0x6d   : > { %1291 = vmatpush.msra.mxu3 %v528_v63  ;;  %563 = vmatpush.msra.mxu1 %v528_v63 }
  0x6e   : > { %1273 = vmatpush.msra.mxu2 %v449_v29  ;;  %476 = vmatpush.msra.mxu0 %v449_v29 }
  0x70   : > { %1274 = vmatpush.msra.mxu2 %v448_v30  ;;  %477 = vmatpush.msra.mxu0 %v448_v30 }
  0x72   : > { %1275 = vmatpush.msra.mxu2 %v447_v31  ;;  %478 = vmatpush.msra.mxu0 %v447_v31 }
  0x73   : > { %503 = vmatmul.f32.vlgmr.msra.gmra.mxu2 %v437_v32  ;;  %479 = vmatmul.f32.vlgmr.msra.gmra.mxu0 %v429_v33 }
  0x7b   : > { %506 = vmatmul.f32.gmra.mxu2 %v438_v34  ;;  %482 = vmatmul.f32.gmra.mxu0 %v430_v35 }
  0x83   : > { %509 = vmatmul.f32.gmra.mxu2 %v439_v36  ;;  %485 = vmatmul.f32.gmra.mxu0 %v431_v37 }
  0x8b   : > { %512 = vmatmul.f32.gmra.mxu2 %v440_v38  ;;  %488 = vmatmul.f32.gmra.mxu0 %v432_v39 }
  0x93   : > { %515 = vmatmul.f32.gmra.mxu2 %v441_v44  ;;  %491 = vmatmul.f32.gmra.mxu0 %v433_v45 }
  0x9b   : > { %518 = vmatmul.f32.gmra.mxu2 %v442_v50  ;;  %494 = vmatmul.f32.gmra.mxu0 %v434_v51 }
  0xa3   : > { %521 = vmatmul.f32.gmra.mxu2 %v443_v56  ;;  %497 = vmatmul.f32.gmra.mxu0 %v435_v57 }
  0xab   : > { %524 = vmatmul.f32.gmra.mxu2 %v444_v61  ;;  %500 = vmatmul.f32.gmra.mxu0 %v436_v62 }
  0xf0   : > { %v480_v0 = vpop.f32.mrf.mxu0 }
  0xf1   : > { %564 = vmatmul.f32.vlgmr.msra.gmra.mxu1 %v480_v0 }
  0xf6   : > { %v504_v1 = vpop.f32.mrf.mxu2 }
  0xf7   : > { %588 = vmatmul.f32.vlgmr.msra.gmra.mxu3 %v504_v1 }
  0xf8   : > { %v483_v2 = vpop.f32.mrf.mxu0 }
  0xf9   : > { %567 = vmatmul.f32.gmra.mxu1 %v483_v2 }
  0xfe   : > { %v507_v3 = vpop.f32.mrf.mxu2 }
  0xff   : > { %591 = vmatmul.f32.gmra.mxu3 %v507_v3 }
 0x100   : > { %v486_v4 = vpop.f32.mrf.mxu0 }
 0x101   : > { %570 = vmatmul.f32.gmra.mxu1 %v486_v4 }
 0x106   : > { %v510_v5 = vpop.f32.mrf.mxu2 }
 0x107   : > { %594 = vmatmul.f32.gmra.mxu3 %v510_v5 }
 0x108   : > { %v489_v6 = vpop.f32.mrf.mxu0 }
 0x109   : > { %573 = vmatmul.f32.gmra.mxu1 %v489_v6 }
 0x10e   : > { %v513_v7 = vpop.f32.mrf.mxu2 }
 0x10f   : > { %597 = vmatmul.f32.gmra.mxu3 %v513_v7 }
 0x110   : > { %v492_v8 = vpop.f32.mrf.mxu0 }
 0x111   : > { %576 = vmatmul.f32.gmra.mxu1 %v492_v8 }
 0x116   : > { %v516_v9 = vpop.f32.mrf.mxu2 }
 0x117   : > { %600 = vmatmul.f32.gmra.mxu3 %v516_v9 }
 0x118   : > { %v495_v10 = vpop.f32.mrf.mxu0 }
 0x119   : > { %579 = vmatmul.f32.gmra.mxu1 %v495_v10 }
 0x11e   : > { %v519_v11 = vpop.f32.mrf.mxu2 }
 0x11f   : > { %603 = vmatmul.f32.gmra.mxu3 %v519_v11 }
 0x120   : > { %v498_v12 = vpop.f32.mrf.mxu0 }
 0x121   : > { %582 = vmatmul.f32.gmra.mxu1 %v498_v12 }
 0x126   : > { %v522_v13 = vpop.f32.mrf.mxu2 }
 0x127   : > { %606 = vmatmul.f32.gmra.mxu3 %v522_v13 }
 0x128   : > { %v501_v14 = vpop.f32.mrf.mxu0 }
 0x129   : > { %585 = vmatmul.f32.gmra.mxu1 %v501_v14 }
 0x12e   : > { %v525_v15 = vpop.f32.mrf.mxu2 }
 0x12f   : > { %609 = vmatmul.f32.gmra.mxu3 %v525_v15 }
 0x16e   : > { %v565_v17 = vpop.f32.mrf.mxu1 }
 0x16f   : > { %v1873_v18 = vadd.f32 %v1394_v16, %v565_v17 }
 0x176   : > { %v568_v19 = vpop.f32.mrf.mxu1 }
 0x177   : > { %v1875_v20 = vadd.f32 %v1394_v16, %v568_v19 }
 0x17a   : > { %v589_v21 = vpop.f32.mrf.mxu3 }
 0x17b   : > { %v1877_v22 = vadd.f32 %v1394_v16, %v589_v21 }
 0x17e   : > { %v571_v23 = vpop.f32.mrf.mxu1 }
 0x17f   : > { %v1879_v24 = vadd.f32 %v1394_v16, %v571_v23 }
 0x182   : > { %v592_v25 = vpop.f32.mrf.mxu3 }
 0x183   : > { %v1881_v26 = vadd.f32 %v1394_v16, %v592_v25 }
 0x186   : > { %v574_v27 = vpop.f32.mrf.mxu1 }
 0x187   : > { %v1883_v28 = vadd.f32 %v1394_v16, %v574_v27 }
 0x18a   : > { %v595_v29 = vpop.f32.mrf.mxu3 }
 0x18b   : > { %v1885_v30 = vadd.f32 %v1394_v16, %v595_v29 }
 0x18e   : > { %v577_v31 = vpop.f32.mrf.mxu1 }
 0x18f   : > { %v1887_v32 = vadd.f32 %v1394_v16, %v577_v31 }
 0x192   : > { %v598_v33 = vpop.f32.mrf.mxu3 }
 0x193   : > { %v1889_v34 = vadd.f32 %v1394_v16, %v598_v33 }
 0x196   : > { %v580_v35 = vpop.f32.mrf.mxu1 }
 0x197   : > { %v1891_v36 = vadd.f32 %v1394_v16, %v580_v35 }
 0x19a   : > { %v601_v37 = vpop.f32.mrf.mxu3 }
 0x19b   : > { %v1893_v38 = vadd.f32 %v1394_v16, %v601_v37 }
 0x19e   : > { %v583_v39 = vpop.f32.mrf.mxu1 }
 0x19f   : > { %v1895_v40 = vadd.f32 %v1394_v16, %v583_v39 }
 0x1a2   : > { %v604_v41 = vpop.f32.mrf.mxu3 }
 0x1a3   : > { %v1897_v42 = vadd.f32 %v1394_v16, %v604_v41 }
 0x1a6   : > { %v586_v43 = vpop.f32.mrf.mxu1 }
 0x1a7   : > { %v1899_v44 = vadd.f32 %v1394_v16, %v586_v43 }
 0x1aa   : > { %v607_v45 = vpop.f32.mrf.mxu3 }
 0x1ab   : > { %v1901_v46 = vadd.f32 %v1394_v16, %v607_v45 }
 0x1af   : > { %617 = sbr.rel (%p1248_p6) target bundleno = 470 (0x1d6), region = 72 }
 0x1b2   : > { %v610_v47 = vpop.f32.mrf.mxu3 }
 0x1b3   : > { %v1903_v48 = vadd.f32 %v1394_v16, %v610_v47 }
 0x1b4   : > { %v618_v49 = vmax.f32 %v1873_v18, 0.0  ;;  %v619_v50 = vmax.f32 %v1875_v20, 0.0  ;;  %v620_v51 = vmax.f32 %v1879_v24, 0.0  ;;  %v621_v52 = vmax.f32 %v1883_v28, 0.0 }
 0x1b5   : > { %v622_v53 = vmax.f32 %v1887_v32, 0.0  ;;  %v623_v54 = vmax.f32 %v1891_v36, 0.0  ;;  %v624_v55 = vmax.f32 %v1895_v40, 0.0  ;;  %v625_v56 = vmax.f32 %v1899_v44, 0.0 }
 0x1b6   : > { %638 = vst [vmem:[%s1909_s11] sm:$0xff] %v618_v49  ;;  %v626_v57 = vmax.f32 %v1877_v22, 0.0  ;;  %v627_v58 = vmax.f32 %v1881_v26, 0.0  ;;  %v628_v59 = vmax.f32 %v1885_v30, 0.0  ;;  %v629_v60 = vmax.f32 %v1889_v34, 0.0 }
 0x1b7   : > { %654 = vst [vmem:[#allocation11] sm:$0xff] %v618_v49  ;;  %v630_v61 = vmax.f32 %v1893_v38, 0.0  ;;  %v631_v62 = vmax.f32 %v1897_v42, 0.0  ;;  %v632_v63 = vmax.f32 %v1901_v46, 0.0  ;;  %v633_v0 = vmax.f32 %v1903_v48, 0.0 }
 0x1b8   : > { %639 = vst [vmem:[%s1909_s11 + $0x8] sm:$0xff] %v619_v50 }
 0x1b9   : > { %655 = vst [vmem:[#allocation11 + $0x8] sm:$0xff] %v619_v50 }
 0x1ba   : > { %640 = vst [vmem:[%s1909_s11 + $0x10] sm:$0xff] %v620_v51 }
 0x1bb   : > { %656 = vst [vmem:[#allocation11 + $0x10] sm:$0xff] %v620_v51 }
 0x1bc   : > { %641 = vst [vmem:[%s1909_s11 + $0x18] sm:$0xff] %v621_v52 }
 0x1bd   : > { %657 = vst [vmem:[#allocation11 + $0x18] sm:$0xff] %v621_v52 }
 0x1be   : > { %642 = vst [vmem:[%s1909_s11 + $0x20] sm:$0xff] %v622_v53 }
 0x1bf   : > { %658 = vst [vmem:[#allocation11 + $0x20] sm:$0xff] %v622_v53 }
 0x1c0   : > { %643 = vst [vmem:[%s1909_s11 + $0x28] sm:$0xff] %v623_v54 }
 0x1c1   : > { %659 = vst [vmem:[#allocation11 + $0x28] sm:$0xff] %v623_v54 }
 0x1c2   : > { %644 = vst [vmem:[%s1909_s11 + $0x30] sm:$0xff] %v624_v55 }
 0x1c3   : > { %660 = vst [vmem:[#allocation11 + $0x30] sm:$0xff] %v624_v55 }
 0x1c4   : > { %645 = vst [vmem:[%s1909_s11 + $0x38] sm:$0xff] %v625_v56 }
 0x1c5   : > { %661 = vst [vmem:[#allocation11 + $0x38] sm:$0xff] %v625_v56 }
 0x1c6   : > { %646 = vst [vmem:[%s1909_s11 + $0x40] sm:$0xff] %v626_v57 }
 0x1c7   : > { %662 = vst [vmem:[#allocation11 + $0x40] sm:$0xff] %v626_v57 }
 0x1c8   : > { %647 = vst [vmem:[%s1909_s11 + $0x48] sm:$0xff] %v627_v58 }
 0x1c9   : > { %663 = vst [vmem:[#allocation11 + $0x48] sm:$0xff] %v627_v58 }
 0x1ca   : > { %648 = vst [vmem:[%s1909_s11 + $0x50] sm:$0xff] %v628_v59 }
 0x1cb   : > { %664 = vst [vmem:[#allocation11 + $0x50] sm:$0xff] %v628_v59 }
 0x1cc   : > { %649 = vst [vmem:[%s1909_s11 + $0x58] sm:$0xff] %v629_v60 }
 0x1cd   : > { %665 = vst [vmem:[#allocation11 + $0x58] sm:$0xff] %v629_v60 }
 0x1ce   : > { %650 = vst [vmem:[%s1909_s11 + $0x60] sm:$0xff] %v630_v61 }
 0x1cf   : > { %666 = vst [vmem:[#allocation11 + $0x60] sm:$0xff] %v630_v61 }
 0x1d0   : > { %651 = vst [vmem:[%s1909_s11 + $0x68] sm:$0xff] %v631_v62 }
 0x1d1   : > { %667 = vst [vmem:[#allocation11 + $0x68] sm:$0xff] %v631_v62 }
 0x1d2   : > { %652 = vst [vmem:[%s1909_s11 + $0x70] sm:$0xff] %v632_v63 }
 0x1d3   : > { %668 = vst [vmem:[#allocation11 + $0x70] sm:$0xff] %v632_v63 }
 0x1d4   : > { %653 = vst [vmem:[%s1909_s11 + $0x78] sm:$0xff] %v633_v0 }
 0x1d5   : > { %669 = vst [vmem:[#allocation11 + $0x78] sm:$0xff] %v633_v0 }
 0x1d6 PF: > { %p1250_p7 = scmp.ne.s32.totalorder %s1635_s24, 1 }
 0x1d8   : > { %672 = sbr.rel (%p1250_p7) target bundleno = 1034 (0x40a), region = 76 }
 0x1dd   : > { %v775_v1 = vld [vmem:[#allocation10 + $0x78] sm:$0xff]  ;;  %v774_v2 = vld [vmem:[#allocation10 + $0x70] sm:$0xff]  ;;  %v773_v3 = vld [vmem:[#allocation10 + $0x68] sm:$0xff] }
 0x1de   : > { %780 = vmatpush.msra.mxu1 %v775_v1  ;;  %v772_v4 = vld [vmem:[#allocation10 + $0x60] sm:$0xff]  ;;  %v771_v5 = vld [vmem:[#allocation10 + $0x58] sm:$0xff]  ;;  %v770_v6 = vld [vmem:[#allocation10 + $0x50] sm:$0xff] }
 0x1df   : > { %v769_v7 = vld [vmem:[#allocation10 + $0x48] sm:$0xff]  ;;  %v768_v8 = vld [vmem:[#allocation10 + $0x40] sm:$0xff]  ;;  %v767_v9 = vld [vmem:[#allocation10 + $0x38] sm:$0xff] }
 0x1e0   : > { %781 = vmatpush.msra.mxu1 %v774_v2  ;;  %v766_v10 = vld [vmem:[#allocation10 + $0x30] sm:$0xff]  ;;  %v765_v11 = vld [vmem:[#allocation10 + $0x28] sm:$0xff]  ;;  %v764_v12 = vld [vmem:[#allocation10 + $0x20] sm:$0xff] }
 0x1e1   : > { %v763_v13 = vld [vmem:[#allocation10 + $0x18] sm:$0xff]  ;;  %v762_v14 = vld [vmem:[#allocation10 + $0x10] sm:$0xff]  ;;  %v761_v15 = vld [vmem:[#allocation10 + $0x8] sm:$0xff] }
 0x1e2   : > { %782 = vmatpush.msra.mxu1 %v773_v3  ;;  %v760_v16 = vld [vmem:[#allocation10] sm:$0xff]  ;;  %v877_v17 = vld [vmem:[#allocation10 + $0xf8] sm:$0xff]  ;;  %v876_v19 = vld [vmem:[#allocation10 + $0xf0] sm:$0xff] }
 0x1e3   : > { %883 = vmatpush.msra.mxu2 %v877_v17  ;;  %v875_v21 = vld [vmem:[#allocation10 + $0xe8] sm:$0xff]  ;;  %v874_v23 = vld [vmem:[#allocation10 + $0xe0] sm:$0xff]  ;;  %v873_v25 = vld [vmem:[#allocation10 + $0xd8] sm:$0xff] }
 0x1e4   : > { %783 = vmatpush.msra.mxu1 %v772_v4  ;;  %v872_v27 = vld [vmem:[#allocation10 + $0xd0] sm:$0xff]  ;;  %v871_v29 = vld [vmem:[#allocation10 + $0xc8] sm:$0xff]  ;;  %v870_v31 = vld [vmem:[#allocation10 + $0xc0] sm:$0xff] }
 0x1e5   : > { %884 = vmatpush.msra.mxu2 %v876_v19  ;;  %v869_v33 = vld [vmem:[#allocation10 + $0xb8] sm:$0xff]  ;;  %v868_v35 = vld [vmem:[#allocation10 + $0xb0] sm:$0xff]  ;;  %v867_v37 = vld [vmem:[#allocation10 + $0xa8] sm:$0xff] }
 0x1e6   : > { %784 = vmatpush.msra.mxu1 %v771_v5  ;;  %v866_v39 = vld [vmem:[#allocation10 + $0xa0] sm:$0xff]  ;;  %v865_v41 = vld [vmem:[#allocation10 + $0x98] sm:$0xff]  ;;  %v864_v43 = vld [vmem:[#allocation10 + $0x90] sm:$0xff] }
 0x1e7   : > { %885 = vmatpush.msra.mxu2 %v875_v21  ;;  %v863_v45 = vld [vmem:[#allocation10 + $0x88] sm:$0xff]  ;;  %v862_v47 = vld [vmem:[#allocation10 + $0x80] sm:$0xff]  ;;  %v1961_v49 = vld [vmem:[%s2085_s5] ss:$0 sm:$0xff] }
 0x1e8   : > { %785 = vmatpush.msra.mxu1 %v770_v6  ;;  %v979_v17 = vld [vmem:[#allocation10 + $0x170] sm:$0xff] }
 0x1e9   : > { %886 = vmatpush.msra.mxu2 %v874_v23  ;;  %v978_v23 = vld [vmem:[#allocation10 + $0x168] sm:$0xff] }
 0x1ea   : > { %786 = vmatpush.msra.mxu1 %v769_v7 }
 0x1eb   : > { %887 = vmatpush.msra.mxu2 %v873_v25 }
 0x1ec   : > { %787 = vmatpush.msra.mxu1 %v768_v8 }
 0x1ed   : > { %888 = vmatpush.msra.mxu2 %v872_v27  ;;  %v977_v27 = vld [vmem:[#allocation10 + $0x160] sm:$0xff] }
 0x1ee   : > { %788 = vmatpush.msra.mxu1 %v767_v9 }
 0x1ef   : > { %889 = vmatpush.msra.mxu2 %v871_v29  ;;  %v689_v29 = vld [vmem:[#allocation10 + $0x1f8] sm:$0xff] }
 0x1f0   : > { %789 = vmatpush.msra.mxu1 %v766_v10  ;;  %695 = vmatpush.msra.mxu0 %v689_v29 }
 0x1f1   : > { %890 = vmatpush.msra.mxu2 %v870_v31  ;;  %v976_v31 = vld [vmem:[#allocation10 + $0x158] sm:$0xff] }
 0x1f2   : > { %790 = vmatpush.msra.mxu1 %v765_v11 }
 0x1f3   : > { %891 = vmatpush.msra.mxu2 %v869_v33  ;;  %v688_v33 = vld [vmem:[#allocation10 + $0x1f0] sm:$0xff] }
 0x1f4   : > { %791 = vmatpush.msra.mxu1 %v764_v12  ;;  %696 = vmatpush.msra.mxu0 %v688_v33 }
 0x1f5   : > { %892 = vmatpush.msra.mxu2 %v868_v35  ;;  %v975_v35 = vld [vmem:[#allocation10 + $0x150] sm:$0xff] }
 0x1f6   : > { %792 = vmatpush.msra.mxu1 %v763_v13 }
 0x1f7   : > { %893 = vmatpush.msra.mxu2 %v867_v37 }
 0x1f8   : > { %793 = vmatpush.msra.mxu1 %v762_v14 }
 0x1f9   : > { %894 = vmatpush.msra.mxu2 %v866_v39 }
 0x1fa   : > { %794 = vmatpush.msra.mxu1 %v761_v15 }
 0x1fb   : > { %895 = vmatpush.msra.mxu2 %v865_v41  ;;  %v687_v41 = vld [vmem:[#allocation10 + $0x1e8] sm:$0xff] }
 0x1fc   : > { %795 = vmatpush.msra.mxu1 %v760_v16  ;;  %v980_v16 = vld [vmem:[#allocation10 + $0x178] sm:$0xff]  ;;  %697 = vmatpush.msra.mxu0 %v687_v41 }
 0x1fd   : > { %796 = vmatmul.f32.vlgmr.msra.gmra.mxu1 %v1873_v18  ;;  %896 = vmatpush.msra.mxu2 %v864_v43  ;;  %v974_v43 = vld [vmem:[#allocation10 + $0x148] sm:$0xff] }
 0x1fe   : > { %986 = vmatpush.msra.mxu3 %v980_v16 }
 0x1ff   : > { %897 = vmatpush.msra.mxu2 %v863_v45 }
 0x200   : > { %987 = vmatpush.msra.mxu3 %v979_v17 }
 0x201   : > { %898 = vmatpush.msra.mxu2 %v862_v47  ;;  %v686_v47 = vld [vmem:[#allocation10 + $0x1e0] sm:$0xff] }
 0x202   : > { %988 = vmatpush.msra.mxu3 %v978_v23  ;;  %698 = vmatpush.msra.mxu0 %v686_v47 }
 0x204   : > { %989 = vmatpush.msra.mxu3 %v977_v27 }
 0x205   : > { %799 = vmatmul.f32.gmra.mxu1 %v1875_v20 }
 0x206   : > { %990 = vmatpush.msra.mxu3 %v976_v31 }
 0x208   : > { %991 = vmatpush.msra.mxu3 %v975_v35 }
 0x20a   : > { %992 = vmatpush.msra.mxu3 %v974_v43 }
 0x20d   : > { %802 = vmatmul.f32.gmra.mxu1 %v1879_v24 }
 0x215   : > { %805 = vmatmul.f32.gmra.mxu1 %v1883_v28 }
 0x21d   : > { %808 = vmatmul.f32.gmra.mxu1 %v1887_v32 }
 0x225   : > { %811 = vmatmul.f32.gmra.mxu1 %v1891_v36 }
 0x22d   : > { %814 = vmatmul.f32.gmra.mxu1 %v1895_v40 }
 0x235   : > { %817 = vmatmul.f32.gmra.mxu1 %v1899_v44 }
 0x23d   : > { %820 = vmatmul.f32.gmra.mxu1 %v1877_v22 }
 0x245   : > { %823 = vmatmul.f32.gmra.mxu1 %v1881_v26 }
 0x24d   : > { %826 = vmatmul.f32.gmra.mxu1 %v1885_v30 }
 0x255   : > { %829 = vmatmul.f32.gmra.mxu1 %v1889_v34 }
 0x25d   : > { %832 = vmatmul.f32.gmra.mxu1 %v1893_v38 }
 0x265   : > { %835 = vmatmul.f32.gmra.mxu1 %v1897_v42 }
 0x26d   : > { %838 = vmatmul.f32.gmra.mxu1 %v1901_v46 }
 0x275   : > { %841 = vmatmul.f32.gmra.mxu1 %v1903_v48 }
 0x27a   : > { %v797_v50 = vpop.f32.mrf.mxu1 }
 0x27b   : > { %v798_v51 = vadd.f32 %v1961_v49, %v797_v50  ;;  %v973_v50 = vld [vmem:[#allocation10 + $0x140] sm:$0xff] }
 0x27c   : > { %993 = vmatpush.msra.mxu3 %v973_v50 }
 0x27d   : > { %v845_v52 = vmax.f32 %v798_v51, 0.0  ;;  %v685_v51 = vld [vmem:[#allocation10 + $0x1d8] sm:$0xff] }
 0x27e   : > { %699 = vmatpush.msra.mxu0 %v685_v51 }
 0x27f   : > { %899 = vmatmul.f32.vlgmr.msra.gmra.mxu2 %v845_v52  ;;  %v972_v52 = vld [vmem:[#allocation10 + $0x138] sm:$0xff] }
 0x280   : > { %994 = vmatpush.msra.mxu3 %v972_v52 }
 0x282   : > { %v800_v53 = vpop.f32.mrf.mxu1 }
 0x283   : > { %v801_v54 = vadd.f32 %v1961_v49, %v800_v53  ;;  %v684_v53 = vld [vmem:[#allocation10 + $0x1d0] sm:$0xff] }
 0x284   : > { %700 = vmatpush.msra.mxu0 %v684_v53 }
 0x285   : > { %v846_v55 = vmax.f32 %v801_v54, 0.0  ;;  %v971_v54 = vld [vmem:[#allocation10 + $0x130] sm:$0xff] }
 0x286   : > { %995 = vmatpush.msra.mxu3 %v971_v54 }
 0x287   : > { %902 = vmatmul.f32.gmra.mxu2 %v846_v55  ;;  %v683_v55 = vld [vmem:[#allocation10 + $0x1c8] sm:$0xff] }
 0x288   : > { %701 = vmatpush.msra.mxu0 %v683_v55 }
 0x28a   : > { %v803_v56 = vpop.f32.mrf.mxu1 }
 0x28b   : > { %v804_v57 = vadd.f32 %v1961_v49, %v803_v56  ;;  %v970_v56 = vld [vmem:[#allocation10 + $0x128] sm:$0xff] }
 0x28c   : > { %996 = vmatpush.msra.mxu3 %v970_v56 }
 0x28d   : > { %v847_v58 = vmax.f32 %v804_v57, 0.0 }
 0x28f   : > { %905 = vmatmul.f32.gmra.mxu2 %v847_v58 }
 0x292   : > { %v806_v59 = vpop.f32.mrf.mxu1 }
 0x293   : > { %v807_v60 = vadd.f32 %v1961_v49, %v806_v59  ;;  %v682_v59 = vld [vmem:[#allocation10 + $0x1c0] sm:$0xff] }
 0x294   : > { %702 = vmatpush.msra.mxu0 %v682_v59 }
 0x295   : > { %v848_v61 = vmax.f32 %v807_v60, 0.0  ;;  %v969_v60 = vld [vmem:[#allocation10 + $0x120] sm:$0xff] }
 0x296   : > { %997 = vmatpush.msra.mxu3 %v969_v60 }
 0x297   : > { %908 = vmatmul.f32.gmra.mxu2 %v848_v61 }
 0x29a   : > { %v809_v62 = vpop.f32.mrf.mxu1 }
 0x29b   : > { %v810_v63 = vadd.f32 %v1961_v49, %v809_v62  ;;  %v681_v62 = vld [vmem:[#allocation10 + $0x1b8] sm:$0xff] }
 0x29c   : > { %703 = vmatpush.msra.mxu0 %v681_v62 }
 0x29d   : > { %v849_v0 = vmax.f32 %v810_v63, 0.0  ;;  %v968_v63 = vld [vmem:[#allocation10 + $0x118] sm:$0xff] }
 0x29e   : > { %998 = vmatpush.msra.mxu3 %v968_v63 }
 0x29f   : > { %911 = vmatmul.f32.gmra.mxu2 %v849_v0  ;;  %v680_v0 = vld [vmem:[#allocation10 + $0x1b0] sm:$0xff] }
 0x2a0   : > { %704 = vmatpush.msra.mxu0 %v680_v0 }
 0x2a2   : > { %v812_v1 = vpop.f32.mrf.mxu1 }
 0x2a3   : > { %v813_v2 = vadd.f32 %v1961_v49, %v812_v1  ;;  %v967_v1 = vld [vmem:[#allocation10 + $0x110] sm:$0xff] }
 0x2a4   : > { %999 = vmatpush.msra.mxu3 %v967_v1 }
 0x2a5   : > { %v850_v3 = vmax.f32 %v813_v2, 0.0 }
 0x2a7   : > { %914 = vmatmul.f32.gmra.mxu2 %v850_v3 }
 0x2aa   : > { %v815_v4 = vpop.f32.mrf.mxu1 }
 0x2ab   : > { %v816_v5 = vadd.f32 %v1961_v49, %v815_v4  ;;  %v679_v4 = vld [vmem:[#allocation10 + $0x1a8] sm:$0xff] }
 0x2ac   : > { %705 = vmatpush.msra.mxu0 %v679_v4 }
 0x2ad   : > { %v851_v6 = vmax.f32 %v816_v5, 0.0  ;;  %v966_v5 = vld [vmem:[#allocation10 + $0x108] sm:$0xff] }
 0x2ae   : > { %1000 = vmatpush.msra.mxu3 %v966_v5 }
 0x2af   : > { %917 = vmatmul.f32.gmra.mxu2 %v851_v6 }
 0x2b2   : > { %v818_v7 = vpop.f32.mrf.mxu1 }
 0x2b3   : > { %v819_v8 = vadd.f32 %v1961_v49, %v818_v7  ;;  %v678_v7 = vld [vmem:[#allocation10 + $0x1a0] sm:$0xff] }
 0x2b4   : > { %706 = vmatpush.msra.mxu0 %v678_v7 }
 0x2b5   : > { %v852_v9 = vmax.f32 %v819_v8, 0.0  ;;  %v965_v8 = vld [vmem:[#allocation10 + $0x100] sm:$0xff] }
 0x2b6   : > { %1001 = vmatpush.msra.mxu3 %v965_v8  ;;  %v2024_v8 = vld [vmem:[%s2085_s5 + $0x3] ss:$0 sm:$0xff] }
 0x2b7   : > { %920 = vmatmul.f32.gmra.mxu2 %v852_v9  ;;  %v677_v9 = vld [vmem:[#allocation10 + $0x198] sm:$0xff] }
 0x2b8   : > { %707 = vmatpush.msra.mxu0 %v677_v9 }
 0x2ba   : > { %v821_v10 = vpop.f32.mrf.mxu1 }
 0x2bb   : > { %v822_v11 = vadd.f32 %v1961_v49, %v821_v10  ;;  %v676_v10 = vld [vmem:[#allocation10 + $0x190] sm:$0xff] }
 0x2bc   : > { %708 = vmatpush.msra.mxu0 %v676_v10 }
 0x2bd   : > { %v853_v12 = vmax.f32 %v822_v11, 0.0 }
 0x2bf   : > { %923 = vmatmul.f32.gmra.mxu2 %v853_v12 }
 0x2c2   : > { %v824_v13 = vpop.f32.mrf.mxu1 }
 0x2c3   : > { %v825_v14 = vadd.f32 %v1961_v49, %v824_v13  ;;  %v675_v13 = vld [vmem:[#allocation10 + $0x188] sm:$0xff] }
 0x2c4   : > { %709 = vmatpush.msra.mxu0 %v675_v13 }
 0x2c5   : > { %v854_v15 = vmax.f32 %v825_v14, 0.0 }
 0x2c7   : > { %926 = vmatmul.f32.gmra.mxu2 %v854_v15  ;;  %v674_v15 = vld [vmem:[#allocation10 + $0x180] sm:$0xff] }
 0x2c8   : > { %710 = vmatpush.msra.mxu0 %v674_v15 }
 0x2c9   : > { %711 = vmatmul.f32.vlgmr.msra.gmra.mxu0 %v1873_v18 }
 0x2ca   : > { %v827_v19 = vpop.f32.mrf.mxu1 }
 0x2cb   : > { %v828_v21 = vadd.f32 %v1961_v49, %v827_v19 }
 0x2cd   : > { %v855_v25 = vmax.f32 %v828_v21, 0.0  ;;  %v1984_v21 = vld [vmem:[%s2085_s5 + $0x1] ss:$0 sm:$0xff] }
 0x2cf   : > { %929 = vmatmul.f32.gmra.mxu2 %v855_v25 }
 0x2d1   : > { %714 = vmatmul.f32.gmra.mxu0 %v1875_v20 }
 0x2d2   : > { %v830_v37 = vpop.f32.mrf.mxu1 }
 0x2d3   : > { %v831_v39 = vadd.f32 %v1961_v49, %v830_v37 }
 0x2d5   : > { %v856_v45 = vmax.f32 %v831_v39, 0.0 }
 0x2d7   : > { %932 = vmatmul.f32.gmra.mxu2 %v856_v45 }
 0x2d9   : > { %717 = vmatmul.f32.gmra.mxu0 %v1879_v24 }
 0x2da   : > { %v833_v57 = vpop.f32.mrf.mxu1 }
 0x2db   : > { %v834_v58 = vadd.f32 %v1961_v49, %v833_v57 }
 0x2dd   : > { %v857_v61 = vmax.f32 %v834_v58, 0.0 }
 0x2df   : > { %935 = vmatmul.f32.gmra.mxu2 %v857_v61 }
 0x2e1   : > { %720 = vmatmul.f32.gmra.mxu0 %v1883_v28 }
 0x2e2   : > { %v836_v2 = vpop.f32.mrf.mxu1 }
 0x2e3   : > { %v837_v3 = vadd.f32 %v1961_v49, %v836_v2 }
 0x2e5   : > { %v858_v6 = vmax.f32 %v837_v3, 0.0 }
 0x2e7   : > { %938 = vmatmul.f32.gmra.mxu2 %v858_v6 }
 0x2e9   : > { %723 = vmatmul.f32.gmra.mxu0 %v1887_v32 }
 0x2ea   : > { %v839_v11 = vpop.f32.mrf.mxu1 }
 0x2eb   : > { %v840_v12 = vadd.f32 %v1961_v49, %v839_v11 }
 0x2ed   : > { %v859_v14 = vmax.f32 %v840_v12, 0.0 }
 0x2ef   : > { %941 = vmatmul.f32.gmra.mxu2 %v859_v14 }
 0x2f1   : > { %726 = vmatmul.f32.gmra.mxu0 %v1891_v36 }
 0x2f2   : > { %v842_v16 = vpop.f32.mrf.mxu1 }
 0x2f3   : > { %v843_v17 = vadd.f32 %v1961_v49, %v842_v16 }
 0x2f5   : > { %v860_v19 = vmax.f32 %v843_v17, 0.0 }
 0x2f7   : > { %944 = vmatmul.f32.gmra.mxu2 %v860_v19 }
 0x2f9   : > { %729 = vmatmul.f32.gmra.mxu0 %v1895_v40 }
 0x301   : > { %732 = vmatmul.f32.gmra.mxu0 %v1899_v44 }
 0x302   : > { %v900_v23 = vpop.f32.mrf.mxu2 }
 0x303   : > { %v901_v25 = vadd.f32 %v1984_v21, %v900_v23 }
 0x305   : > { %v948_v27 = vmax.f32 %v901_v25, 0.0 }
 0x307   : > { %1002 = vmatmul.f32.vlgmr.msra.gmra.mxu3 %v948_v27 }
 0x309   : > { %735 = vmatmul.f32.gmra.mxu0 %v1877_v22 }
 0x30a   : > { %v903_v18 = vpop.f32.mrf.mxu2 }
 0x30b   : > { %v904_v49 = vadd.f32 %v1984_v21, %v903_v18 }
 0x30d   : > { %v949_v29 = vmax.f32 %v904_v49, 0.0 }
 0x30f   : > { %1005 = vmatmul.f32.gmra.mxu3 %v949_v29 }
 0x311   : > { %738 = vmatmul.f32.gmra.mxu0 %v1881_v26 }
 0x312   : > { %v906_v20 = vpop.f32.mrf.mxu2 }
 0x313   : > { %v907_v31 = vadd.f32 %v1984_v21, %v906_v20 }
 0x315   : > { %v950_v33 = vmax.f32 %v907_v31, 0.0 }
 0x317   : > { %1008 = vmatmul.f32.gmra.mxu3 %v950_v33 }
 0x319   : > { %741 = vmatmul.f32.gmra.mxu0 %v1885_v30 }
 0x31a   : > { %v909_v24 = vpop.f32.mrf.mxu2 }
 0x31b   : > { %v910_v35 = vadd.f32 %v1984_v21, %v909_v24 }
 0x31d   : > { %v951_v37 = vmax.f32 %v910_v35, 0.0 }
 0x31f   : > { %1011 = vmatmul.f32.gmra.mxu3 %v951_v37 }
 0x321   : > { %744 = vmatmul.f32.gmra.mxu0 %v1889_v34 }
 0x322   : > { %v912_v28 = vpop.f32.mrf.mxu2 }
 0x323   : > { %v913_v39 = vadd.f32 %v1984_v21, %v912_v28 }
 0x325   : > { %v952_v41 = vmax.f32 %v913_v39, 0.0 }
 0x327   : > { %1014 = vmatmul.f32.gmra.mxu3 %v952_v41 }
 0x329   : > { %747 = vmatmul.f32.gmra.mxu0 %v1893_v38 }
 0x32a   : > { %v915_v32 = vpop.f32.mrf.mxu2 }
 0x32b   : > { %v916_v43 = vadd.f32 %v1984_v21, %v915_v32 }
 0x32d   : > { %v953_v45 = vmax.f32 %v916_v43, 0.0 }
 0x32f   : > { %1017 = vmatmul.f32.gmra.mxu3 %v953_v45 }
 0x331   : > { %750 = vmatmul.f32.gmra.mxu0 %v1897_v42 }
 0x332   : > { %v918_v36 = vpop.f32.mrf.mxu2 }
 0x333   : > { %v919_v47 = vadd.f32 %v1984_v21, %v918_v36 }
 0x335   : > { %v954_v50 = vmax.f32 %v919_v47, 0.0 }
 0x337   : > { %1020 = vmatmul.f32.gmra.mxu3 %v954_v50 }
 0x339   : > { %753 = vmatmul.f32.gmra.mxu0 %v1901_v46 }
 0x33a   : > { %v921_v40 = vpop.f32.mrf.mxu2 }
 0x33b   : > { %v922_v51 = vadd.f32 %v1984_v21, %v921_v40 }
 0x33d   : > { %v955_v52 = vmax.f32 %v922_v51, 0.0 }
 0x33f   : > { %1023 = vmatmul.f32.gmra.mxu3 %v955_v52 }
 0x341   : > { %756 = vmatmul.f32.gmra.mxu0 %v1903_v48  ;;  %v2019_v48 = vld [vmem:[%s2085_s5 + $0x2] ss:$0 sm:$0xff] }
 0x342   : > { %v924_v44 = vpop.f32.mrf.mxu2 }
 0x343   : > { %v925_v53 = vadd.f32 %v1984_v21, %v924_v44 }
 0x345   : > { %v956_v54 = vmax.f32 %v925_v53, 0.0 }
 0x346   : > { %v712_v0 = vpop.f32.mrf.mxu0 }
 0x347   : > { %1026 = vmatmul.f32.gmra.mxu3 %v956_v54  ;;  %v713_v12 = vadd.f32 %v2024_v8, %v712_v0 }
 0x34a   : > { %v927_v22 = vpop.f32.mrf.mxu2 }
 0x34b   : > { %v928_v55 = vadd.f32 %v1984_v21, %v927_v22 }
 0x34d   : > { %v957_v56 = vmax.f32 %v928_v55, 0.0 }
 0x34e   : > { %v715_v3 = vpop.f32.mrf.mxu0 }
 0x34f   : > { %1029 = vmatmul.f32.gmra.mxu3 %v957_v56  ;;  %v716_v19 = vadd.f32 %v2024_v8, %v715_v3 }
 0x352   : > { %v930_v26 = vpop.f32.mrf.mxu2 }
 0x353   : > { %v931_v57 = vadd.f32 %v1984_v21, %v930_v26 }
 0x355   : > { %v958_v58 = vmax.f32 %v931_v57, 0.0 }
 0x356   : > { %v718_v7 = vpop.f32.mrf.mxu0 }
 0x357   : > { %1032 = vmatmul.f32.gmra.mxu3 %v958_v58  ;;  %v719_v18 = vadd.f32 %v2024_v8, %v718_v7 }
 0x35a   : > { %v933_v30 = vpop.f32.mrf.mxu2 }
 0x35b   : > { %v934_v59 = vadd.f32 %v1984_v21, %v933_v30 }
 0x35d   : > { %v959_v60 = vmax.f32 %v934_v59, 0.0 }
 0x35e   : > { %v721_v9 = vpop.f32.mrf.mxu0 }
 0x35f   : > { %1035 = vmatmul.f32.gmra.mxu3 %v959_v60  ;;  %v722_v24 = vadd.f32 %v2024_v8, %v721_v9 }
 0x362   : > { %v936_v34 = vpop.f32.mrf.mxu2 }
 0x363   : > { %v937_v61 = vadd.f32 %v1984_v21, %v936_v34 }
 0x365   : > { %v960_v62 = vmax.f32 %v937_v61, 0.0 }
 0x366   : > { %v724_v16 = vpop.f32.mrf.mxu0 }
 0x367   : > { %1038 = vmatmul.f32.gmra.mxu3 %v960_v62  ;;  %v725_v32 = vadd.f32 %v2024_v8, %v724_v16 }
 0x36a   : > { %v939_v38 = vpop.f32.mrf.mxu2 }
 0x36b   : > { %v940_v63 = vadd.f32 %v1984_v21, %v939_v38 }
 0x36d   : > { %v961_v1 = vmax.f32 %v940_v63, 0.0 }
 0x36e   : > { %v727_v49 = vpop.f32.mrf.mxu0 }
 0x36f   : > { %1041 = vmatmul.f32.gmra.mxu3 %v961_v1  ;;  %v728_v40 = vadd.f32 %v2024_v8, %v727_v49 }
 0x372   : > { %v942_v42 = vpop.f32.mrf.mxu2 }
 0x373   : > { %v943_v2 = vadd.f32 %v1984_v21, %v942_v42 }
 0x375   : > { %v962_v4 = vmax.f32 %v943_v2, 0.0 }
 0x376   : > { %v730_v37 = vpop.f32.mrf.mxu0 }
 0x377   : > { %1044 = vmatmul.f32.gmra.mxu3 %v962_v4  ;;  %v731_v22 = vadd.f32 %v2024_v8, %v730_v37 }
 0x37a   : > { %v945_v46 = vpop.f32.mrf.mxu2 }
 0x37b   : > { %v946_v5 = vadd.f32 %v1984_v21, %v945_v46 }
 0x37d   : > { %v963_v6 = vmax.f32 %v946_v5, 0.0 }
 0x37e   : > { %v733_v36 = vpop.f32.mrf.mxu0 }
 0x37f   : > { %1047 = vmatmul.f32.gmra.mxu3 %v963_v6  ;;  %v734_v58 = vadd.f32 %v2024_v8, %v733_v36 }
 0x386   : > { %v736_v53 = vpop.f32.mrf.mxu0 }
 0x387   : > { %v737_v62 = vadd.f32 %v2024_v8, %v736_v53 }
 0x38a   : > { %v1003_v10 = vpop.f32.mrf.mxu3 }
 0x38b   : > { %v1004_v11 = vadd.f32 %v2019_v48, %v1003_v10 }
 0x38d   : > { %v1051_v13 = vmax.f32 %v1004_v11, 0.0 }
 0x38e   : > { %v739_v30 = vpop.f32.mrf.mxu0 }
 0x38f   : > { %v1067_v14 = vadd.f32 %v1051_v13, %v713_v12  ;;  %v740_v2 = vadd.f32 %v2024_v8, %v739_v30 }
 0x391   : > { %1083 = vst [vmem:[#allocation11] sm:$0xff] %v1067_v14 }
 0x392   : > { %v1006_v15 = vpop.f32.mrf.mxu3 }
 0x393   : > { %v1007_v17 = vadd.f32 %v2019_v48, %v1006_v15 }
 0x395   : > { %v1052_v21 = vmax.f32 %v1007_v17, 0.0 }
 0x396   : > { %v742_v63 = vpop.f32.mrf.mxu0 }
 0x397   : > { %v1068_v23 = vadd.f32 %v1052_v21, %v716_v19  ;;  %v743_v7 = vadd.f32 %v2024_v8, %v742_v63 }
 0x399   : > { %1084 = vst [vmem:[#allocation11 + $0x8] sm:$0xff] %v1068_v23 }
 0x39a   : > { %v1009_v25 = vpop.f32.mrf.mxu3 }
 0x39b   : > { %v1010_v27 = vadd.f32 %v2019_v48, %v1009_v25 }
 0x39d   : > { %v1053_v29 = vmax.f32 %v1010_v27, 0.0 }
 0x39e   : > { %v745_v46 = vpop.f32.mrf.mxu0 }
 0x39f   : > { %v1069_v20 = vadd.f32 %v1053_v29, %v719_v18  ;;  %v746_v14 = vadd.f32 %v2024_v8, %v745_v46 }
 0x3a1   : > { %1085 = vst [vmem:[#allocation11 + $0x10] sm:$0xff] %v1069_v20 }
 0x3a2   : > { %v1012_v31 = vpop.f32.mrf.mxu3 }
 0x3a3   : > { %v1013_v33 = vadd.f32 %v2019_v48, %v1012_v31 }
 0x3a5   : > { %v1054_v35 = vmax.f32 %v1013_v33, 0.0 }
 0x3a6   : > { %v748_v12 = vpop.f32.mrf.mxu0 }
 0x3a7   : > { %v1070_v28 = vadd.f32 %v1054_v35, %v722_v24  ;;  %v749_v21 = vadd.f32 %v2024_v8, %v748_v12 }
 0x3a9   : > { %1086 = vst [vmem:[#allocation11 + $0x18] sm:$0xff] %v1070_v28 }
 0x3aa   : > { %v1015_v39 = vpop.f32.mrf.mxu3 }
 0x3ab   : > { %v1016_v41 = vadd.f32 %v2019_v48, %v1015_v39 }
 0x3ad   : > { %v1055_v43 = vmax.f32 %v1016_v41, 0.0 }
 0x3ae   : > { %v751_v23 = vpop.f32.mrf.mxu0 }
 0x3af   : > { %v1071_v45 = vadd.f32 %v1055_v43, %v725_v32  ;;  %v752_v29 = vadd.f32 %v2024_v8, %v751_v23 }
 0x3b1   : > { %1087 = vst [vmem:[#allocation11 + $0x20] sm:$0xff] %v1071_v45 }
 0x3b2   : > { %v1018_v47 = vpop.f32.mrf.mxu3 }
 0x3b3   : > { %v1019_v50 = vadd.f32 %v2019_v48, %v1018_v47 }
 0x3b5   : > { %v1056_v51 = vmax.f32 %v1019_v50, 0.0 }
 0x3b6   : > { %v754_v31 = vpop.f32.mrf.mxu0 }
 0x3b7   : > { %v1072_v52 = vadd.f32 %v1056_v51, %v728_v40  ;;  %v755_v37 = vadd.f32 %v2024_v8, %v754_v31 }
 0x3b9   : > { %1088 = vst [vmem:[#allocation11 + $0x28] sm:$0xff] %v1072_v52 }
 0x3ba   : > { %v1021_v44 = vpop.f32.mrf.mxu3 }
 0x3bb   : > { %v1022_v54 = vadd.f32 %v2019_v48, %v1021_v44 }
 0x3bd   : > { %v1057_v55 = vmax.f32 %v1022_v54, 0.0 }
 0x3be   : > { %v757_v41 = vpop.f32.mrf.mxu0 }
 0x3bf   : > { %v1073_v56 = vadd.f32 %v1057_v55, %v731_v22  ;;  %v758_v45 = vadd.f32 %v2024_v8, %v757_v41 }
 0x3c1   : > { %1089 = vst [vmem:[#allocation11 + $0x30] sm:$0xff] %v1073_v56 }
 0x3c2   : > { %v1024_v26 = vpop.f32.mrf.mxu3 }
 0x3c3   : > { %v1025_v57 = vadd.f32 %v2019_v48, %v1024_v26 }
 0x3c5   : > { %v1058_v59 = vmax.f32 %v1025_v57, 0.0 }
 0x3c7   : > { %v1074_v60 = vadd.f32 %v1058_v59, %v734_v58 }
 0x3c9   : > { %1090 = vst [vmem:[#allocation11 + $0x38] sm:$0xff] %v1074_v60 }
 0x3ca   : > { %v1027_v34 = vpop.f32.mrf.mxu3 }
 0x3cb   : > { %v1028_v61 = vadd.f32 %v2019_v48, %v1027_v34 }
 0x3cd   : > { %v1059_v38 = vmax.f32 %v1028_v61, 0.0 }
 0x3cf   : > { %v1075_v0 = vadd.f32 %v1059_v38, %v737_v62 }
 0x3d1   : > { %1091 = vst [vmem:[#allocation11 + $0x40] sm:$0xff] %v1075_v0 }
 0x3d2   : > { %v1030_v1 = vpop.f32.mrf.mxu3 }
 0x3d3   : > { %v1031_v42 = vadd.f32 %v2019_v48, %v1030_v1 }
 0x3d5   : > { %v1060_v3 = vmax.f32 %v1031_v42, 0.0 }
 0x3d7   : > { %v1076_v4 = vadd.f32 %v1060_v3, %v740_v2 }
 0x3d9   : > { %1092 = vst [vmem:[#allocation11 + $0x48] sm:$0xff] %v1076_v4 }
 0x3da   : > { %v1033_v5 = vpop.f32.mrf.mxu3 }
 0x3db   : > { %v1034_v6 = vadd.f32 %v2019_v48, %v1033_v5 }
 0x3dd   : > { %v1061_v9 = vmax.f32 %v1034_v6, 0.0 }
 0x3df   : > { %v1077_v10 = vadd.f32 %v1061_v9, %v743_v7 }
 0x3e1   : > { %1093 = vst [vmem:[#allocation11 + $0x50] sm:$0xff] %v1077_v10 }
 0x3e2   : > { %v1036_v11 = vpop.f32.mrf.mxu3 }
 0x3e3   : > { %v1037_v13 = vadd.f32 %v2019_v48, %v1036_v11 }
 0x3e5   : > { %v1062_v15 = vmax.f32 %v1037_v13, 0.0 }
 0x3e7   : > { %v1078_v16 = vadd.f32 %v1062_v15, %v746_v14 }
 0x3e9   : > { %1094 = vst [vmem:[#allocation11 + $0x58] sm:$0xff] %v1078_v16 }
 0x3ea   : > { %v1039_v17 = vpop.f32.mrf.mxu3 }
 0x3eb   : > { %v1040_v19 = vadd.f32 %v2019_v48, %v1039_v17 }
 0x3ed   : > { %v1063_v25 = vmax.f32 %v1040_v19, 0.0 }
 0x3ef   : > { %v1079_v27 = vadd.f32 %v1063_v25, %v749_v21 }
 0x3f1   : > { %1095 = vst [vmem:[#allocation11 + $0x60] sm:$0xff] %v1079_v27 }
 0x3f2   : > { %v1042_v18 = vpop.f32.mrf.mxu3 }
 0x3f3   : > { %v1043_v49 = vadd.f32 %v2019_v48, %v1042_v18 }
 0x3f5   : > { %v1064_v20 = vmax.f32 %v1043_v49, 0.0 }
 0x3f7   : > { %v1080_v33 = vadd.f32 %v1064_v20, %v752_v29 }
 0x3f9   : > { %1096 = vst [vmem:[#allocation11 + $0x68] sm:$0xff] %v1080_v33 }
 0x3fa   : > { %v1045_v24 = vpop.f32.mrf.mxu3 }
 0x3fb   : > { %v1046_v35 = vadd.f32 %v2019_v48, %v1045_v24 }
 0x3fd   : > { %v1065_v28 = vmax.f32 %v1046_v35, 0.0 }
 0x3ff   : > { %v1081_v39 = vadd.f32 %v1065_v28, %v755_v37 }
 0x401   : > { %1097 = vst [vmem:[#allocation11 + $0x70] sm:$0xff] %v1081_v39 }
 0x402   : > { %v1048_v32 = vpop.f32.mrf.mxu3 }
 0x403   : > { %v1049_v43 = vadd.f32 %v2019_v48, %v1048_v32 }
 0x405   : > { %v1066_v36 = vmax.f32 %v1049_v43, 0.0 }
 0x407   : > { %v1082_v47 = vadd.f32 %v1066_v36, %v758_v45 }
 0x409   : > { %1098 = vst [vmem:[#allocation11 + $0x78] sm:$0xff] %v1082_v47 }
 0x40a PF: > { %p1336_p8 = scmp.eq.s32.totalorder %s1717_s27, 1  ;;  %s1109_s20 = sshll.u32 %s2086_s6, 4  ;;  %s1110_s20 = int_to_ptr.hbm [resolvable:$true] %s1109_s20 }
 0x40b   : > { %s1650_s13 = smov [#allocation11]   ;;  %s1651_s14 = smov 128  }
 0x40c   : > { %s1107_s10 = sshll.u32 %s1650_s13, 4  ;;  %s1652_s15 = smov 8   ;;  %s1108_s10 = int_to_ptr.vmem [resolvable:$true] %s1107_s10 }
 0x40d   : > { %1309 = dma.vmem_to_hbm [thread:$0]  (%p1336_p8), %s1108_s10, 2048, %s1110_s20, [#allocation5], %s1651_s14, %s1651_s14, %s1652_s15  }
 0x40e   : > { %1618 = dma.done.wait (%p1336_p8), [#allocation5], 2048  }
 0x40f   : > { %1620 = vsyncadd (%p1336_p8), [#allocation5], 4294965248 }
 0x410 PF: > { %s19_s26 = sadd.s32 1, %s1643_s26   ;;  %s2106_s21 = smov %s1627_s22 }
 0x411   : > { %p16_p9 = scmp.ge.s32.totalorder %s19_s26, 4   ;;  %s2107_s22 = smov %s1631_s23 }
 0x412   : > { %s2108_s23 = smov %s1775_s12  ;;  %s2109_s24 = smov %s1639_s25 }
 0x413   : > { %s2110_s25 = smov %s2112_s19  ;;  %18 = sbr.rel (!%p16_p9) target bundleno = 10 (0xa), region = 125 }
 0x418   :  { %1126 = vsyncpa [#allocation4], 1 }
 0x419   :  { %1128 = vsyncpa [#allocation4 + $0x1], 1 }
 0x41a   :  { %1129 = vsyncpa [#allocation7], 1 }
 0x41b   :  { %1130 = vsyncpa [#allocation5], 1 }
 0x41c   :  { %1132 = vsyncpa [#allocation5 + $0x1], 1 }

</bundles_post_ra>
